<compile_context>
chip_gen: v6e
topology: v6e:2x2x1
jax: 0.10.0
libtpu: 0.0.40
codegen_flags: <defaults>
</compile_context>

<pallas_src>
import functools

import jax
import jax.numpy as jnp
from jax import lax
from jax.experimental import pallas as pl
from jax.experimental.pallas import tpu as pltpu


def _round_up(v, m):
    return (v + m - 1) // m * m


def _vq_kernel(x_ref, emb_ref,                        # inputs
               q_ref, cs_ref, dw_ref, sse_ref,        # outputs
               e2_ref,                                # scratch
               *, blocks_per_split, n_valid, k_valid, needs_row_mask):
    c = pl.program_id(0)          # core-split axis ("parallel")
    i = pl.program_id(1)          # streamed-N axis ("arbitrary", reduction)
    tn = x_ref.shape[0]
    k_pad = emb_ref.shape[0]

    emb = emb_ref[...].astype(jnp.float32)            # (Kp, Dp), resident across grid

    @pl.when(i == 0)
    def _init():
        # |e|^2 computed once per split; cs / dw / sse are cross-block accumulators.
        e2_ref[...] = jnp.sum(emb * emb, axis=1)[None, :]          # (1, Kp)
        cs_ref[...] = jnp.zeros_like(cs_ref)
        dw_ref[...] = jnp.zeros_like(dw_ref)
        sse_ref[...] = jnp.zeros_like(sse_ref)

    x = x_ref[...].astype(jnp.float32)                # (TN, Dp)

    # Squared distances up to the per-row constant |x|^2 (irrelevant for argmin):
    #   dist = |e|^2 - 2 * x @ e^T     (trans_b dot_general -> MXU, no transpose copy)
    xe = lax.dot_general(x, emb, (((1,), (1,)), ((), ())),
                         preferred_element_type=jnp.float32)       # (TN, Kp)
    dist = e2_ref[...] - 2.0 * xe

    col = lax.broadcasted_iota(jnp.int32, dist.shape, 1)
    if k_valid < k_pad:                               # mask padded codebook entries
        dist = jnp.where(col < k_valid, dist, 1e30)

    # First-min argmin along the codebook axis (matches torch.argmin tie-breaking).
    dmin = jnp.min(dist, axis=1, keepdims=True)                    # (TN, 1)
    idx = jnp.min(jnp.where(dist <= dmin, col, k_pad),
                  axis=1, keepdims=True)                           # (TN, 1)

    enc = col == idx                                               # one-hot (bool)
    if needs_row_mask:                                # mask rows that are pure padding
        row = (lax.broadcasted_iota(jnp.int32, dist.shape, 0)
               + (c * blocks_per_split + i) * tn)
        enc = enc & (row < n_valid)
    enc = enc.astype(jnp.float32)                                  # (TN, Kp)

    # F.embedding equivalent: gather-by-matmul on the MXU.
    q = jnp.dot(enc, emb, preferred_element_type=jnp.float32)      # (TN, Dp)
    q_ref[...] = q.astype(q_ref.dtype)

    # EMA statistics, accumulated across the streamed-N axis (per split).
    cs_ref[...] += jnp.sum(enc, axis=0)[None, None, :]             # (1, 1, Kp)
    dw_ref[...] += lax.dot_general(enc, x, (((0,), (0,)), ((), ())),
                                   preferred_element_type=jnp.float32)[None]  # (1,Kp,Dp)

    # Commitment-loss numerator kept lane-dense as per-column partial sums.
    diff = x - q
    sse_ref[...] += jnp.sum(diff * diff, axis=0)[None, None, :]    # (1, 1, Dp)


def _vq_pallas(x, embeddings, *, tile_n=1024, n_splits=2):
    n, d = x.shape
    k, d2 = embeddings.shape
    assert d == d2

    d_pad = _round_up(d, 128)
    k_pad = _round_up(k, 128)
    tn = min(_round_up(tile_n, 8), _round_up(n, 8))
    blocks = pl.cdiv(n, tn)
    n_splits = int(n_splits) if blocks >= int(n_splits) else 1
    blocks_per_split = pl.cdiv(blocks, n_splits)
    n_pad = n_splits * blocks_per_split * tn
    needs_row_mask = (n_pad != n)

    xp = x if (n_pad, d_pad) == (n, d) else jnp.pad(x, ((0, n_pad - n), (0, d_pad - d)))
    ep = (embeddings if (k_pad, d_pad) == (k, d)
          else jnp.pad(embeddings, ((0, k_pad - k), (0, d_pad - d))))

    kernel = functools.partial(_vq_kernel, blocks_per_split=blocks_per_split,
                               n_valid=n, k_valid=k, needs_row_mask=needs_row_mask)

    q, cs, dw, sse = pl.pallas_call(
        kernel,
        out_shape=(
            jax.ShapeDtypeStruct((n_pad, d_pad), x.dtype),              # quantized
            jax.ShapeDtypeStruct((n_splits, 1, k_pad), jnp.float32),    # cluster sizes
            jax.ShapeDtypeStruct((n_splits, k_pad, d_pad), jnp.float32),  # enc^T @ x
            jax.ShapeDtypeStruct((n_splits, 1, d_pad), jnp.float32),    # sq-err partials
        ),
        grid_spec=pltpu.PrefetchScalarGridSpec(
            num_scalar_prefetch=0,
            grid=(n_splits, blocks_per_split),
            in_specs=[
                pl.BlockSpec((tn, d_pad),
                             lambda c, i: (c * blocks_per_split + i, 0)),   # streamed x
                pl.BlockSpec((k_pad, d_pad), lambda c, i: (0, 0)),          # codebook
            ],
            out_specs=(
                pl.BlockSpec((tn, d_pad),
                             lambda c, i: (c * blocks_per_split + i, 0)),   # streamed q
                pl.BlockSpec((1, 1, k_pad), lambda c, i: (c, 0, 0)),        # cs per split
                pl.BlockSpec((1, k_pad, d_pad), lambda c, i: (c, 0, 0)),    # dw per split
                pl.BlockSpec((1, 1, d_pad), lambda c, i: (c, 0, 0)),        # sse per split
            ),
            scratch_shapes=[pltpu.VMEM((1, k_pad), jnp.float32)],           # |e|^2
        ),
        compiler_params=pltpu.CompilerParams(
            # Outer split axis is safe to shard across TensorCores (independent
            # accumulator blocks per split); inner N axis carries the reduction.
            dimension_semantics=("parallel", "arbitrary"),
            vmem_limit_bytes=48 * 1024 * 1024,
        ),
    )(xp, ep)

    cluster_size = jnp.sum(cs[:, 0, :k], axis=0)        # (K,)
    dw_full = jnp.sum(dw[:, :k, :d], axis=0)            # (K, D)
    sse_total = jnp.sum(sse)                            # scalar (padding contributes 0)
    return q[:n, :d], cluster_size, dw_full, sse_total


@functools.partial(
    jax.jit,
    static_argnames=("commitment_cost", "decay", "epsilon", "tile_n", "n_splits"))
def vq_ema_forward(x, embeddings, ema_dw_hidden, ema_cs_hidden, counter, *,
                   commitment_cost=0.25, decay=0.99, epsilon=1e-5,
                   tile_n=1024, n_splits=2):
    """Functional equivalent of VectorQuantizerEMA.forward on flat x of shape (N, D).

    Returns (quantized_st, loss, new_embeddings, new_ema_dw_hidden,
             new_ema_cs_hidden, new_counter).
    """
    n, d = x.shape
    k = embeddings.shape[0]

    quantized, cluster_size, dw, sse = _vq_pallas(
        x, embeddings, tile_n=tile_n, n_splits=n_splits)

    # F.mse_loss(x, quantized.detach())
    e_latent_loss = sse / jnp.float32(n * d)
    loss = commitment_cost * e_latent_loss

    # --- ExponentialMovingAverage updates (torch.no_grad; tiny elementwise glue) ---
    new_counter = counter + 1
    bias_corr = 1.0 - decay ** new_counter.astype(jnp.float32)

    new_cs_hidden = ema_cs_hidden - (ema_cs_hidden - cluster_size) * (1.0 - decay)
    updated_cs = new_cs_hidden / bias_corr
    n_total = jnp.sum(updated_cs)
    updated_cs = (updated_cs + epsilon) / (n_total + k * epsilon) * n_total

    new_dw_hidden = ema_dw_hidden - (ema_dw_hidden - dw) * (1.0 - decay)
    updated_dw = new_dw_hidden / bias_corr

    new_embeddings = updated_dw / updated_cs.reshape(-1, 1)

    # Straight-through estimator: x + (quantized - x).detach()
    # TODO(synk): pallas_call has no VJP; add a custom_vjp (identity ST path +
    # commitment gradient) if end-to-end autodiff through the quantizer is needed.
    quantized_st = x + lax.stop_gradient(quantized - x)

    return (quantized_st, loss, new_embeddings,
            new_dw_hidden, new_cs_hidden, new_counter)


if __name__ == "__main__":
    embedding_dim = 32
    num_embeddings = 64
    batch, hw = 2, 16

    key = jax.random.PRNGKey(0)
    k_emb, k_x = jax.random.split(key)

    # Deterministic xavier_uniform init for the codebook (fan_in=D, fan_out=K).
    bound = (6.0 / (num_embeddings + embedding_dim)) ** 0.5
    embeddings = jax.random.uniform(
        k_emb, (num_embeddings, embedding_dim), jnp.float32, -bound, bound)

    # NCHW conv feature map -> NHWC -> (N*H*W, C) flat input (what the module expects).
    x_nchw = jax.random.normal(k_x, (batch, embedding_dim, hw, hw), jnp.float32)
    flat_x = jnp.transpose(x_nchw, (0, 2, 3, 1)).reshape(-1, embedding_dim)  # (512, 32)

    # EMA buffers start at zero, counter at 0 (fresh module).
    ema_dw_hidden = jnp.zeros((num_embeddings, embedding_dim), jnp.float32)
    ema_cs_hidden = jnp.zeros((num_embeddings,), jnp.float32)
    counter = jnp.zeros((), jnp.int32)

    out = vq_ema_forward(flat_x, embeddings, ema_dw_hidden, ema_cs_hidden, counter,
                         commitment_cost=0.25, decay=0.99, epsilon=1e-5,
                         tile_n=128, n_splits=2)  # 2x2 grid for the demo shapes
    quantized, loss, new_emb, new_dw_h, new_cs_h, new_counter = (
        jax.block_until_ready(out))

    # --- pure-JAX reference (same math as the PyTorch module) ---
    dists = (jnp.sum(flat_x ** 2, axis=1, keepdims=True)
             + jnp.sum(embeddings ** 2, axis=1)
             - 2.0 * flat_x @ embeddings.T)
    idx_ref = jnp.argmin(dists, axis=1)
    q_ref = embeddings[idx_ref]
    loss_ref = 0.25 * jnp.mean((flat_x - q_ref) ** 2)

    assert quantized.shape == flat_x.shape
    assert new_emb.shape == (num_embeddings, embedding_dim)
    assert loss.shape == ()
    assert bool(jnp.isfinite(loss))
    assert bool(jnp.allclose(quantized, flat_x + (q_ref - flat_x), atol=1e-5))
    assert bool(jnp.allclose(loss, loss_ref, rtol=1e-4, atol=1e-6))
    print("KERNEL_OK")
</pallas_src>

<mosaic_0001>
module attributes {stable_mosaic.version = 11 : i64} {
  func.func @_vq_kernel(%arg0: i32, %arg1: i32, %arg2: memref<128x128xf32, #tpu.memory_space<vmem>>, %arg3: memref<128x128xf32, #tpu.memory_space<vmem>>, %arg4: memref<128x128xf32, #tpu.memory_space<vmem>>, %arg5: memref<1x1x128xf32, #tpu.memory_space<vmem>>, %arg6: memref<1x128x128xf32, #tpu.memory_space<vmem>>, %arg7: memref<1x1x128xf32, #tpu.memory_space<vmem>>, %arg8: memref<1x128xf32, #tpu.memory_space<vmem>>) attributes {dimension_semantics = [#tpu.dimension_semantics<parallel>, #tpu.dimension_semantics<arbitrary>], iteration_bounds = array<i64: 2, 2>, scalar_prefetch = 0 : i64, scratch_operands = 1 : i64, tpu.core_type = #tpu.core_type<tc>, window_params = [{transform_indices = @transform_0, window_bounds = array<i64: 128, 128>}, {pipeline_mode = #tpu.pipeline_mode<synchronous>, transform_indices = @transform_1, window_bounds = array<i64: 128, 128>}, {transform_indices = @transform_2, window_bounds = array<i64: 128, 128>}, {transform_indices = @transform_3, window_bounds = array<i64: 1, 1, 128>}, {transform_indices = @transform_4, window_bounds = array<i64: 1, 128, 128>}, {transform_indices = @transform_5, window_bounds = array<i64: 1, 1, 128>}]} {
    %c0 = arith.constant 0 : index
    %c0_0 = arith.constant 0 : index
    %0 = vector.load %arg3[%c0, %c0_0] : memref<128x128xf32, #tpu.memory_space<vmem>>, vector<128x128xf32>
    %c0_i32 = arith.constant 0 : i32
    %1 = arith.cmpi eq, %arg1, %c0_i32 : i32
    %2 = arith.extui %1 : i1 to i32
    %c0_i32_1 = arith.constant 0 : i32
    %3 = arith.cmpi ne, %2, %c0_i32_1 : i32
    scf.if %3 {
      %47 = arith.mulf %0, %0 : vector<128x128xf32>
      %cst_34 = arith.constant dense<0.000000e+00> : vector<128xf32>
      %48 = vector.multi_reduction <add>, %47, %cst_34 [1] : vector<128x128xf32> to vector<128xf32>
      %49 = vector.shape_cast %48 : vector<128xf32> to vector<1x128xf32>
      %c0_35 = arith.constant 0 : index
      %c0_36 = arith.constant 0 : index
      %50 = vector.load %arg8[%c0_35, %c0_36] : memref<1x128xf32, #tpu.memory_space<vmem>>, vector<1x128xf32>
      tpu.vector_store %arg8[%c0_35, %c0_36], %49 {strides = array<i32>} : memref<1x128xf32, #tpu.memory_space<vmem>>, vector<1x128xf32>,
      %cst_37 = arith.constant 0.000000e+00 : f32
      %51 = vector.broadcast %cst_37 : f32 to vector<1x1x128xf32>
      %c0_38 = arith.constant 0 : index
      %c0_39 = arith.constant 0 : index
      %c0_40 = arith.constant 0 : index
      %52 = vector.load %arg5[%c0_38, %c0_39, %c0_40] : memref<1x1x128xf32, #tpu.memory_space<vmem>>, vector<1x1x128xf32>
      tpu.vector_store %arg5[%c0_38, %c0_39, %c0_40], %51 {strides = array<i32>} : memref<1x1x128xf32, #tpu.memory_space<vmem>>, vector<1x1x128xf32>,
      %cst_41 = arith.constant 0.000000e+00 : f32
      %53 = vector.broadcast %cst_41 : f32 to vector<1x128x128xf32>
      %c0_42 = arith.constant 0 : index
      %c0_43 = arith.constant 0 : index
      %c0_44 = arith.constant 0 : index
      %54 = vector.load %arg6[%c0_42, %c0_43, %c0_44] : memref<1x128x128xf32, #tpu.memory_space<vmem>>, vector<1x128x128xf32>
      tpu.vector_store %arg6[%c0_42, %c0_43, %c0_44], %53 {strides = array<i32>} : memref<1x128x128xf32, #tpu.memory_space<vmem>>, vector<1x128x128xf32>,
      %cst_45 = arith.constant 0.000000e+00 : f32
      %55 = vector.broadcast %cst_45 : f32 to vector<1x1x128xf32>
      %c0_46 = arith.constant 0 : index
      %c0_47 = arith.constant 0 : index
      %c0_48 = arith.constant 0 : index
      %56 = vector.load %arg7[%c0_46, %c0_47, %c0_48] : memref<1x1x128xf32, #tpu.memory_space<vmem>>, vector<1x1x128xf32>
      tpu.vector_store %arg7[%c0_46, %c0_47, %c0_48], %55 {strides = array<i32>} : memref<1x1x128xf32, #tpu.memory_space<vmem>>, vector<1x1x128xf32>,
    } else {
    }
    %c0_2 = arith.constant 0 : index
    %c0_3 = arith.constant 0 : index
    %4 = vector.load %arg2[%c0_2, %c0_3] : memref<128x128xf32, #tpu.memory_space<vmem>>, vector<128x128xf32>
    %cst = arith.constant dense<0.000000e+00> : vector<128x128xf32>
    %5 = tpu.matmul %4, %0, %cst {dimension_numbers = #tpu.dot_dimension_numbers<[1], [1], [0], [0], [0, 0, 1, 0], [], []>} : vector<128x128xf32>, vector<128x128xf32>, vector<128x128xf32> -> vector<128x128xf32>
    %c0_4 = arith.constant 0 : index
    %c0_5 = arith.constant 0 : index
    %6 = vector.load %arg8[%c0_4, %c0_5] : memref<1x128xf32, #tpu.memory_space<vmem>>, vector<1x128xf32>
    %cst_6 = arith.constant 2.000000e+00 : f32
    %7 = vector.broadcast %cst_6 : f32 to vector<128x128xf32>
    %8 = arith.mulf %7, %5 : vector<128x128xf32>
    %9 = vector.broadcast %6 : vector<1x128xf32> to vector<128x128xf32>
    %10 = arith.subf %9, %8 : vector<128x128xf32>
    %11 = tpu.iota {dimensions = array<i32: 1>} : vector<128x128xi32>
    %c64_i32 = arith.constant 64 : i32
    %12 = vector.broadcast %c64_i32 : i32 to vector<128x128xi32>
    %13 = arith.cmpi slt, %11, %12 : vector<128x128xi32>
    %cst_7 = arith.constant 1.000000e+30 : f32
    %14 = vector.broadcast %cst_7 : f32 to vector<128x128xf32>
    %15 = arith.select %13, %10, %14 : vector<128x128xi1>, vector<128x128xf32>
    %cst_8 = arith.constant dense<0x7F800000> : vector<128xf32>
    %16 = vector.multi_reduction <minimumf>, %15, %cst_8 [1] : vector<128x128xf32> to vector<128xf32>
    %17 = vector.shape_cast %16 : vector<128xf32> to vector<128x1xf32>
    %18 = vector.broadcast %17 : vector<128x1xf32> to vector<128x128xf32>
    %19 = arith.cmpf ole, %15, %18 : vector<128x128xf32>
    %c128_i32 = arith.constant 128 : i32
    %20 = vector.broadcast %c128_i32 : i32 to vector<128x128xi32>
    %21 = arith.select %19, %11, %20 : vector<128x128xi1>, vector<128x128xi32>
    %cst_9 = arith.constant dense<2147483647> : vector<128xi32>
    %22 = vector.multi_reduction <minsi>, %21, %cst_9 [1] : vector<128x128xi32> to vector<128xi32>
    %23 = vector.shape_cast %22 : vector<128xi32> to vector<128x1xi32>
    %24 = vector.broadcast %23 : vector<128x1xi32> to vector<128x128xi32>
    %25 = arith.cmpi eq, %11, %24 : vector<128x128xi32>
    %26 = arith.extui %25 : vector<128x128xi1> to vector<128x128xi32>
    %27 = arith.sitofp %26 : vector<128x128xi32> to vector<128x128xf32>
    %cst_10 = arith.constant dense<0.000000e+00> : vector<128x128xf32>
    %28 = tpu.matmul %27, %0, %cst_10 {dimension_numbers = #tpu.dot_dimension_numbers<[1], [0], [0], [1], [0, 0, 1, 1], [], []>} : vector<128x128xf32>, vector<128x128xf32>, vector<128x128xf32> -> vector<128x128xf32>
    %c0_11 = arith.constant 0 : index
    %c0_12 = arith.constant 0 : index
    %29 = vector.load %arg4[%c0_11, %c0_12] : memref<128x128xf32, #tpu.memory_space<vmem>>, vector<128x128xf32>
    tpu.vector_store %arg4[%c0_11, %c0_12], %28 {strides = array<i32>} : memref<128x128xf32, #tpu.memory_space<vmem>>, vector<128x128xf32>,
    %c0_13 = arith.constant 0 : index
    %c0_14 = arith.constant 0 : index
    %c0_15 = arith.constant 0 : index
    %30 = vector.load %arg5[%c0_13, %c0_14, %c0_15] : memref<1x1x128xf32, #tpu.memory_space<vmem>>, vector<1x1x128xf32>
    %cst_16 = arith.constant dense<0.000000e+00> : vector<128xf32>
    %31 = vector.multi_reduction <add>, %27, %cst_16 [0] : vector<128x128xf32> to vector<128xf32>
    %32 = vector.shape_cast %31 : vector<128xf32> to vector<1x1x128xf32>
    %33 = arith.addf %30, %32 : vector<1x1x128xf32>
    %c0_17 = arith.constant 0 : index
    %c0_18 = arith.constant 0 : index
    %c0_19 = arith.constant 0 : index
    %34 = vector.load %arg5[%c0_17, %c0_18, %c0_19] : memref<1x1x128xf32, #tpu.memory_space<vmem>>, vector<1x1x128xf32>
    tpu.vector_store %arg5[%c0_17, %c0_18, %c0_19], %33 {strides = array<i32>} : memref<1x1x128xf32, #tpu.memory_space<vmem>>, vector<1x1x128xf32>,
    %c0_20 = arith.constant 0 : index
    %c0_21 = arith.constant 0 : index
    %c0_22 = arith.constant 0 : index
    %35 = vector.load %arg6[%c0_20, %c0_21, %c0_22] : memref<1x128x128xf32, #tpu.memory_space<vmem>>, vector<1x128x128xf32>
    %cst_23 = arith.constant dense<0.000000e+00> : vector<128x128xf32>
    %36 = tpu.matmul %27, %4, %cst_23 {dimension_numbers = #tpu.dot_dimension_numbers<[0], [0], [1], [1], [0, 1, 1, 1], [], []>} : vector<128x128xf32>, vector<128x128xf32>, vector<128x128xf32> -> vector<128x128xf32>
    %37 = vector.shape_cast %36 : vector<128x128xf32> to vector<1x128x128xf32>
    %38 = arith.addf %35, %37 : vector<1x128x128xf32>
    %c0_24 = arith.constant 0 : index
    %c0_25 = arith.constant 0 : index
    %c0_26 = arith.constant 0 : index
    %39 = vector.load %arg6[%c0_24, %c0_25, %c0_26] : memref<1x128x128xf32, #tpu.memory_space<vmem>>, vector<1x128x128xf32>
    tpu.vector_store %arg6[%c0_24, %c0_25, %c0_26], %38 {strides = array<i32>} : memref<1x128x128xf32, #tpu.memory_space<vmem>>, vector<1x128x128xf32>,
    %40 = arith.subf %4, %28 : vector<128x128xf32>
    %c0_27 = arith.constant 0 : index
    %c0_28 = arith.constant 0 : index
    %c0_29 = arith.constant 0 : index
    %41 = vector.load %arg7[%c0_27, %c0_28, %c0_29] : memref<1x1x128xf32, #tpu.memory_space<vmem>>, vector<1x1x128xf32>
    %42 = arith.mulf %40, %40 : vector<128x128xf32>
    %cst_30 = arith.constant dense<0.000000e+00> : vector<128xf32>
    %43 = vector.multi_reduction <add>, %42, %cst_30 [0] : vector<128x128xf32> to vector<128xf32>
    %44 = vector.shape_cast %43 : vector<128xf32> to vector<1x1x128xf32>
    %45 = arith.addf %41, %44 : vector<1x1x128xf32>
    %c0_31 = arith.constant 0 : index
    %c0_32 = arith.constant 0 : index
    %c0_33 = arith.constant 0 : index
    %46 = vector.load %arg7[%c0_31, %c0_32, %c0_33] : memref<1x1x128xf32, #tpu.memory_space<vmem>>, vector<1x1x128xf32>
    tpu.vector_store %arg7[%c0_31, %c0_32, %c0_33], %45 {strides = array<i32>} : memref<1x1x128xf32, #tpu.memory_space<vmem>>, vector<1x1x128xf32>,
    return
  }
  func.func @transform_0(%arg0: i32, %arg1: i32) -> (i32, i32) {
    %c2_i32 = arith.constant 2 : i32
    %0 = arith.muli %arg0, %c2_i32 : i32
    %1 = arith.addi %0, %arg1 : i32
    %c0_i32 = arith.constant 0 : i32
    %c0_i32_0 = arith.constant 0 : i32
    return %1, %c0_i32 : i32, i32
  }
  func.func @transform_1(%arg0: i32, %arg1: i32) -> (i32, i32) {
    %c0_i32 = arith.constant 0 : i32
    %c0_i32_0 = arith.constant 0 : i32
    %c0_i32_1 = arith.constant 0 : i32
    return %c0_i32, %c0_i32_0 : i32, i32
  }
  func.func @transform_2(%arg0: i32, %arg1: i32) -> (i32, i32) {
    %c2_i32 = arith.constant 2 : i32
    %0 = arith.muli %arg0, %c2_i32 : i32
    %1 = arith.addi %0, %arg1 : i32
    %c0_i32 = arith.constant 0 : i32
    %c0_i32_0 = arith.constant 0 : i32
    return %1, %c0_i32 : i32, i32
  }
  func.func @transform_3(%arg0: i32, %arg1: i32) -> (i32, i32, i32) {
    %c0_i32 = arith.constant 0 : i32
    %c0_i32_0 = arith.constant 0 : i32
    %c0_i32_1 = arith.constant 0 : i32
    return %arg0, %c0_i32, %c0_i32_0 : i32, i32, i32
  }
  func.func @transform_4(%arg0: i32, %arg1: i32) -> (i32, i32, i32) {
    %c0_i32 = arith.constant 0 : i32
    %c0_i32_0 = arith.constant 0 : i32
    %c0_i32_1 = arith.constant 0 : i32
    return %arg0, %c0_i32, %c0_i32_0 : i32, i32, i32
  }
  func.func @transform_5(%arg0: i32, %arg1: i32) -> (i32, i32, i32) {
    %c0_i32 = arith.constant 0 : i32
    %c0_i32_0 = arith.constant 0 : i32
    %c0_i32_1 = arith.constant 0 : i32
    return %arg0, %c0_i32, %c0_i32_0 : i32, i32, i32
  }
}

</mosaic_0001>

<bundles_post_ra>
// kernel: vq_ema_forward.1
= control target key start
LH: loop header
LB: loop body
LE: loop exit
PB: predicated region body
PF: predicated region fallthrough
CT: control target
= control target key end

     0   :  { %s2136_s18 = smov 0   ;;  %s2138_s19 = smov 0   ;;  %s2991_s0 = inlined_call_operand.vmem [shape: f32[512,128], index: 0, kind: input, shape index: {}]   ;;  %s2992_s1 = inlined_call_operand.vmem [shape: f32[128,128], index: 1, kind: input, shape index: {}]   ;;  %s2993_s2 = inlined_call_operand.vmem [shape: f32[512,128], index: 2, kind: output, shape index: {0}]   ;;  %s2994_s3 = inlined_call_operand.vmem [shape: f32[2,1,128], index: 3, kind: output, shape index: {1}]   ;;  %s2995_s4 = inlined_call_operand.vmem [shape: f32[2,128,128], index: 4, kind: output, shape index: {2}]   ;;  %s2996_s5 = inlined_call_operand.vmem [shape: f32[2,1,128], index: 5, kind: output, shape index: {3}]  }
   0x1   :  { %s2140_s20 = smov 0   ;;  %s2142_s21 = smov 0  }
   0x2   :  { %s2144_s22 = smov 0  }
   0x3 LB: > { %s25_s23 = sadd.s32 1, %s2093_s20  ;;  %s28_s24 = sadd.s32 1, %s2097_s21  ;;  %s2101_s22 = sphi %s2144_s22, %s16_s22   ;;  %s2097_s21 = sphi %s2142_s21, %s3000_s21   ;;  %s2093_s20 = sphi %s2140_s20, %s2999_s20   ;;  %s2089_s19 = sphi %s2138_s19, %s2998_s19   ;;  %s2085_s18 = sphi %s2136_s18, %s2997_s18  }
   0x4   : > { %p26_p0 = scmp.ge.s32.totalorder %s25_s23, 2  ;;  %p1694_p1 = scmp.ge.s32.totalorder %s2101_s22, 1 }
   0x5   : > { %p219_p2 = scmp.lt.s32.totalorder %s2101_s22, 5 }
   0x6   : > { %s3002_s23 = smov (%p26_p0, %s25_s23), 0  ;;  %s3004_s24 = smov (!%p26_p0, %s28_s24), %s2097_s21 }
   0x7   : > { %p220_p3 = pnand %p1694_p1, %p219_p2  ;;  %p30_p4 = scmp.ge.s32.totalorder %s3004_s24, 2 }
   0x8   : > { %s1695_s25 = sshll.u32 (!%p220_p3), %s2089_s19, 1  ;;  %p282_p5 = scmp.lt.s32.totalorder (!%p220_p3), %s2089_s19, 1 }
   0x9   : > { %s3006_s24 = smov (%p30_p4, %s3004_s24), 0  ;;  %223 = sbr.rel (%p220_p3) target bundleno = 1271 (0x4f7), region = 28 }
   0xa   : > { %s263_s7 = sadd.s32 (!%p220_p3), %s2085_s18, %s1695_s25  ;;  %p1703_p7 = scmp.ne.s32.totalorder (!%p220_p3), %s2085_s18, 0 }
   0xb   : > { %s1696_s14 = sshll.u32 (!%p220_p3), %s263_s7, 4 }
   0xc   : > { %p265_p6 = scmp.lt.s32.totalorder (!%p220_p3), %s1696_s14, 63 }
   0xe   : > { %v2175_v0 = vld [vmem:[%s2992_s1] sm:$0xff]  ;;  %v2180_v1 = vld [vmem:[%s2992_s1 + $0x8] sm:$0xff]  ;;  %v2185_v2 = vld [vmem:[%s2992_s1 + $0x10] sm:$0xff]  ;;  %s3008_s19 = smov (!%p282_p5, %s2089_s19), 1  ;;  %s3010_s14 = smov (!%p265_p6, %s1696_s14), 63 }
   0xf   : > { %v2191_v3 = vld [vmem:[%s2992_s1 + $0x18] sm:$0xff]  ;;  %v2196_v4 = vld [vmem:[%s2992_s1 + $0x20] sm:$0xff]  ;;  %v2201_v5 = vld [vmem:[%s2992_s1 + $0x28] sm:$0xff]  ;;  %s2259_s27 = scalar_lea.vmem %s2994_s3, %s3008_s19  ;;  %s1739_s28 = sshll.u32 %s3008_s19, 7 }
  0x10   : > { %v2206_v6 = vld [vmem:[%s2992_s1 + $0x30] sm:$0xff]  ;;  %v2211_v7 = vld [vmem:[%s2992_s1 + $0x38] sm:$0xff]  ;;  %v2216_v8 = vld [vmem:[%s2992_s1 + $0x40] sm:$0xff]  ;;  %s1697_s29 = sshll.u32 %s3010_s14, 3  ;;  %s2264_s7 = scalar_lea.vmem %s2995_s4, %s1739_s28 }
  0x11   : > { %v2221_v9 = vld [vmem:[%s2992_s1 + $0x48] sm:$0xff]  ;;  %v2226_v10 = vld [vmem:[%s2992_s1 + $0x50] sm:$0xff]  ;;  %v2231_v11 = vld [vmem:[%s2992_s1 + $0x58] sm:$0xff]  ;;  %s2269_s10 = scalar_lea.vmem %s2991_s0, %s1697_s29  ;;  %s2274_s13 = scalar_lea.vmem %s2993_s2, %s1697_s29 }
  0x12   : > { %v2239_v12 = vld [vmem:[%s2992_s1 + $0x60] sm:$0xff]  ;;  %v2244_v13 = vld [vmem:[%s2992_s1 + $0x68] sm:$0xff]  ;;  %v2249_v14 = vld [vmem:[%s2992_s1 + $0x70] sm:$0xff]  ;;  %s2279_s17 = scalar_lea.vmem %s2996_s5, %s3008_s19  ;;  %312 = sbr.rel (%p1703_p7) target bundleno = 196 (0xc4), region = 32 }
  0x13   : > { %v2254_v15 = vld [vmem:[%s2992_s1 + $0x78] sm:$0xff] }
  0x17   : > { %v313_v16 = vmul.f32 %v2175_v0, %v2175_v0  ;;  %v315_v17 = vmul.f32 %v2185_v2, %v2185_v2  ;;  %v314_v18 = vmul.f32 %v2180_v1, %v2180_v1  ;;  %v316_v19 = vmul.f32 %v2191_v3, %v2191_v3 }
  0x18   : > { %v317_v20 = vmul.f32 %v2196_v4, %v2196_v4  ;;  %v318_v21 = vmul.f32 %v2201_v5, %v2201_v5  ;;  %v319_v22 = vmul.f32 %v2206_v6, %v2206_v6  ;;  %v320_v23 = vmul.f32 %v2211_v7, %v2211_v7 }
  0x19   : > { %329 = vadd.xlane.f32.xlu0 %v313_v16  ;;  %333 = vadd.xlane.f32.xlu1 %v315_v17  ;;  %v321_v24 = vmul.f32 %v2216_v8, %v2216_v8  ;;  %v322_v25 = vmul.f32 %v2221_v9, %v2221_v9  ;;  %v323_v26 = vmul.f32 %v2226_v10, %v2226_v10  ;;  %v2103_v32 = vmov 0.0  }
  0x1a   : > { %v324_v27 = vmul.f32 %v2231_v11, %v2231_v11  ;;  %v325_v28 = vmul.f32 %v2239_v12, %v2239_v12  ;;  %v326_v29 = vmul.f32 %v2244_v13, %v2244_v13  ;;  %v327_v30 = vmul.f32 %v2249_v14, %v2249_v14  ;;  %490 = vst [vmem:[%s2259_s27] sm:$0x1] %v2103_v32 }
  0x1b   : > { %v328_v31 = vmul.f32 %v2254_v15, %v2254_v15  ;;  %491 = vst [vmem:[%s2264_s7] sm:$0xff] %v2103_v32  ;;  %492 = vst [vmem:[%s2264_s7 + $0x8] sm:$0xff] %v2103_v32  ;;  %v377_v33 = vlaneseq  ;;  %vm388_vm0 = vcmask 130112   ;;  %vm395_vm1 = vcmask 195712  }
  0x1c   : > { %493 = vst [vmem:[%s2264_s7 + $0x10] sm:$0xff] %v2103_v32  ;;  %494 = vst [vmem:[%s2264_s7 + $0x18] sm:$0xff] %v2103_v32  ;;  %vm402_vm2 = vcmask 261312   ;;  %vm409_vm3 = vcmask 326912   ;;  %vm416_vm4 = vcmask 392512   ;;  %vm423_vm5 = vcmask 458112  }
  0x1d   : > { %331 = vadd.xlane.f32.xlu0 %v314_v18  ;;  %335 = vadd.xlane.f32.xlu1 %v316_v19  ;;  %495 = vst [vmem:[%s2264_s7 + $0x20] sm:$0xff] %v2103_v32  ;;  %496 = vst [vmem:[%s2264_s7 + $0x28] sm:$0xff] %v2103_v32  ;;  %v2332_v34 = vand.u32 127, %v377_v33  ;;  %v2334_v35 = vshrl.u32 %v377_v33, 7  ;;  %vm430_vm6 = vcmask 523712   ;;  %vm437_vm7 = vcmask 589312  }
  0x1e   : > { %497 = vst [vmem:[%s2264_s7 + $0x30] sm:$0xff] %v2103_v32  ;;  %498 = vst [vmem:[%s2264_s7 + $0x38] sm:$0xff] %v2103_v32  ;;  %vm444_vm8 = vcmask 654912   ;;  %vm451_vm9 = vcmask 720512   ;;  %vm458_vm10 = vcmask 786112   ;;  %vm465_vm11 = vcmask 851712  }
  0x1f   : > { %499 = vst [vmem:[%s2264_s7 + $0x40] sm:$0xff] %v2103_v32  ;;  %500 = vst [vmem:[%s2264_s7 + $0x48] sm:$0xff] %v2103_v32  ;;  %v383_v36 = vadd.s32 4294967288, %v2332_v34  ;;  %v397_v37 = vadd.s32 4294967272, %v2332_v34  ;;  %v390_v38 = vadd.s32 4294967280, %v2332_v34  ;;  %v404_v41 = vadd.s32 4294967264, %v2332_v34 }
  0x20   : > { %501 = vst [vmem:[%s2264_s7 + $0x50] sm:$0xff] %v2103_v32  ;;  %502 = vst [vmem:[%s2264_s7 + $0x58] sm:$0xff] %v2103_v32  ;;  %v381_v42 = vsub.s32 %v2332_v34, %v2334_v35  ;;  %v411_v46 = vadd.s32 4294967256, %v2332_v34  ;;  %v418_v53 = vadd.s32 4294967248, %v2332_v34  ;;  %v425_v56 = vadd.s32 4294967240, %v2332_v34 }
  0x21   : > { %337 = vadd.xlane.f32.xlu0 %v317_v20  ;;  %339 = vadd.xlane.f32.xlu1 %v318_v21  ;;  %503 = vst [vmem:[%s2264_s7 + $0x60] sm:$0xff] %v2103_v32  ;;  %504 = vst [vmem:[%s2264_s7 + $0x68] sm:$0xff] %v2103_v32  ;;  %v386_v43 = vsub.s32 %v383_v36, %v2334_v35  ;;  %v400_v44 = vsub.s32 %v397_v37, %v2334_v35  ;;  %v432_v16 = vadd.s32 4294967232, %v2332_v34  ;;  %vm472_vm12 = vcmask 917312  }
  0x22   : > { %505 = vst [vmem:[%s2264_s7 + $0x70] sm:$0xff] %v2103_v32  ;;  %506 = vst [vmem:[%s2264_s7 + $0x78] sm:$0xff] %v2103_v32  ;;  %v393_v45 = vsub.s32 %v390_v38, %v2334_v35  ;;  %v407_v49 = vsub.s32 %v404_v41, %v2334_v35  ;;  %v414_v55 = vsub.s32 %v411_v46, %v2334_v35  ;;  %v439_v19 = vadd.s32 4294967224, %v2332_v34 }
  0x23   : > { %507 = vst [vmem:[%s2279_s17] sm:$0x1] %v2103_v32  ;;  %v421_v63 = vsub.s32 %v418_v53, %v2334_v35  ;;  %v428_v18 = vsub.s32 %v425_v56, %v2334_v35  ;;  %v460_v37 = vadd.s32 4294967200, %v2332_v34  ;;  %v467_v41 = vadd.s32 4294967192, %v2332_v34 }
  0x24   : > { %vm479_vm13 = vcmask 982912   ;;  %vm486_vm14 = vcmask 1048512  }
  0x25   : > { %341 = vadd.xlane.f32.xlu0 %v319_v22  ;;  %343 = vadd.xlane.f32.xlu1 %v320_v23  ;;  %v463_v46 = vsub.s32 %v460_v37, %v2334_v35 }
  0x29   : > { %345 = vadd.xlane.f32.xlu0 %v321_v24  ;;  %347 = vadd.xlane.f32.xlu1 %v322_v25  ;;  %v435_v24 = vsub.s32 %v432_v16, %v2334_v35  ;;  %v446_v25 = vadd.s32 4294967216, %v2332_v34 }
  0x2b   : > { %v449_v36 = vsub.s32 %v446_v25, %v2334_v35 }
  0x2d   : > { %349 = vadd.xlane.f32.xlu0 %v323_v26  ;;  %351 = vadd.xlane.f32.xlu1 %v324_v27 }
  0x31   : > { %353 = vadd.xlane.f32.xlu0 %v325_v28  ;;  %355 = vadd.xlane.f32.xlu1 %v326_v29  ;;  %v442_v28 = vsub.s32 %v439_v19, %v2334_v35  ;;  %v453_v29 = vadd.s32 4294967208, %v2332_v34 }
  0x35   : > { %357 = vadd.xlane.f32.xlu0 %v327_v30  ;;  %359 = vadd.xlane.f32.xlu1 %v328_v31 }
  0xa2   : > { %v330_v39 = vpop.xlane.xlu0 %329  ;;  %v334_v40 = vpop.xlane.xlu1 %333 }
  0xa3   : > { %v382_v50 = vrot.slane %v330_v39, %v381_v42  ;;  %v394_v54 = vrot.slane %v334_v40, %v393_v45  ;;  %v456_v40 = vsub.s32 %v453_v29, %v2334_v35 }
  0xa6   : > { %v332_v47 = vpop.xlane.xlu0 %331  ;;  %v336_v48 = vpop.xlane.xlu1 %335 }
  0xa7   : > { %v387_v51 = vrot.slane %v332_v47, %v386_v43  ;;  %v401_v52 = vrot.slane %v336_v48, %v400_v44  ;;  %v474_v47 = vadd.s32 4294967184, %v2332_v34  ;;  %v481_v48 = vadd.s32 4294967176, %v2332_v34 }
  0xa9   : > { %v389_v57 = vsel %vm388_vm0, %v387_v51, %v382_v50  ;;  %v470_v51 = vsub.s32 %v467_v41, %v2334_v35  ;;  %v477_v56 = vsub.s32 %v474_v47, %v2334_v35 }
  0xaa   : > { %v396_v58 = vsel %vm395_vm1, %v394_v54, %v389_v57  ;;  %v338_v59 = vpop.xlane.xlu0 %337  ;;  %v340_v60 = vpop.xlane.xlu1 %339  ;;  %v484_v57 = vsub.s32 %v481_v48, %v2334_v35 }
  0xab   : > { %v403_v61 = vsel %vm402_vm2, %v401_v52, %v396_v58  ;;  %v408_v62 = vrot.slane %v338_v59, %v407_v49  ;;  %v415_v17 = vrot.slane %v340_v60, %v414_v55 }
  0xad   : > { %v410_v20 = vsel %vm409_vm3, %v408_v62, %v403_v61 }
  0xae   : > { %v342_v21 = vpop.xlane.xlu0 %341  ;;  %v344_v22 = vpop.xlane.xlu1 %343  ;;  %v417_v26 = vsel %vm416_vm4, %v415_v17, %v410_v20 }
  0xaf   : > { %v422_v23 = vrot.slane %v342_v21, %v421_v63  ;;  %v429_v27 = vrot.slane %v344_v22, %v428_v18 }
  0xb1   : > { %v424_v30 = vsel %vm423_vm5, %v422_v23, %v417_v26 }
  0xb2   : > { %v346_v31 = vpop.xlane.xlu0 %345  ;;  %v348_v32 = vpop.xlane.xlu1 %347  ;;  %v431_v38 = vsel %vm430_vm6, %v429_v27, %v424_v30 }
  0xb3   : > { %v436_v33 = vrot.slane %v346_v31, %v435_v24  ;;  %v443_v39 = vrot.slane %v348_v32, %v442_v28 }
  0xb5   : > { %v438_v42 = vsel %vm437_vm7, %v436_v33, %v431_v38 }
  0xb6   : > { %v350_v43 = vpop.xlane.xlu0 %349  ;;  %v352_v44 = vpop.xlane.xlu1 %351  ;;  %v445_v49 = vsel %vm444_vm8, %v443_v39, %v438_v42 }
  0xb7   : > { %v450_v45 = vrot.slane %v350_v43, %v449_v36  ;;  %v457_v50 = vrot.slane %v352_v44, %v456_v40 }
  0xb9   : > { %v452_v52 = vsel %vm451_vm9, %v450_v45, %v445_v49 }
  0xba   : > { %v354_v53 = vpop.xlane.xlu0 %353  ;;  %v356_v54 = vpop.xlane.xlu1 %355  ;;  %v459_v58 = vsel %vm458_vm10, %v457_v50, %v452_v52 }
  0xbb   : > { %v464_v55 = vrot.slane %v354_v53, %v463_v46  ;;  %v471_v59 = vrot.slane %v356_v54, %v470_v51 }
  0xbd   : > { %v466_v60 = vsel %vm465_vm11, %v464_v55, %v459_v58 }
  0xbe   : > { %v358_v34 = vpop.xlane.xlu0 %357  ;;  %v360_v61 = vpop.xlane.xlu1 %359  ;;  %v473_v16 = vsel %vm472_vm12, %v471_v59, %v466_v60 }
  0xbf   : > { %v478_v62 = vrot.slane %v358_v34, %v477_v56  ;;  %v485_v63 = vrot.slane %v360_v61, %v484_v57 }
  0xc1   : > { %v480_v17 = vsel %vm479_vm13, %v478_v62, %v473_v16 }
  0xc2   : > { %v487_v18 = vsel %vm486_vm14, %v485_v63, %v480_v17 }
  0xc3   : > { %489 = vst [vmem:[#allocation2] sm:$0x1] %v487_v18 }
  0xc4 PF: > { %1836 = vmatprep.subr.mxu0 %v2254_v15  ;;  %v508_v19 = vld [vmem:[%s2269_s10] sm:$0xff]  ;;  %1892 = vmatprep.subr.mxu1 %v2254_v15 }
  0xc5   : > { %1837 = vmatpush3.xpose.msra.mxu0 %v2254_v15  ;;  %1868 = vmatprep.mubr.f32.mxu0 %v508_v19 }
  0xc6   : > { %1838 = vmatprep.subr.mxu0 %v2249_v14  ;;  %1893 = vmatpush3.msra.mxu1 %v2254_v15  ;;  %v708_v15 = vlaneseq }
  0xc7   : > { %1894 = vmatprep.subr.mxu1 %v2249_v14 }
  0xc8   : > { %1895 = vmatpush3.msra.mxu1 %v2249_v14  ;;  %v2494_v21 = vand.u32 127, %v708_v15 }
  0xc9   : > { %1839 = vmatpush3.xpose.msra.mxu0 %v2249_v14  ;;  %1896 = vmatprep.subr.mxu1 %v2244_v13  ;;  %v2489_v14 = vld [vmem:[%s2269_s10 + $0x70] sm:$0xff] }
  0xca   : > { %1840 = vmatprep.subr.mxu0 %v2244_v13  ;;  %1897 = vmatpush3.msra.mxu1 %v2244_v13  ;;  %v2496_v25 = vld [vmem:[#allocation2] ss:$0 sm:$0xff]  ;;  %vm710_vm15 = vcmp.lt.s32.totalorder %v2494_v21, 64 }
  0xcb   : > { %1898 = vmatprep.subr.mxu1 %v2239_v12 }
  0xcc   : > { %1899 = vmatpush3.msra.mxu1 %v2239_v12 }
  0xcd   : > { %1841 = vmatpush3.xpose.msra.mxu0 %v2244_v13  ;;  %1900 = vmatprep.subr.mxu1 %v2231_v11  ;;  %v2486_v13 = vld [vmem:[%s2269_s10 + $0x68] sm:$0xff] }
  0xce   : > { %1842 = vmatprep.subr.mxu0 %v2239_v12  ;;  %1901 = vmatpush3.msra.mxu1 %v2231_v11 }
  0xcf   : > { %1902 = vmatprep.subr.mxu1 %v2226_v10 }
  0xd0   : > { %1903 = vmatpush3.msra.mxu1 %v2226_v10 }
  0xd1   : > { %1843 = vmatpush3.xpose.msra.mxu0 %v2239_v12  ;;  %1904 = vmatprep.subr.mxu1 %v2221_v9  ;;  %v2481_v12 = vld [vmem:[%s2269_s10 + $0x60] sm:$0xff] }
  0xd2   : > { %1844 = vmatprep.subr.mxu0 %v2231_v11  ;;  %1905 = vmatpush3.msra.mxu1 %v2221_v9 }
  0xd3   : > { %1906 = vmatprep.subr.mxu1 %v2216_v8 }
  0xd4   : > { %1907 = vmatpush3.msra.mxu1 %v2216_v8 }
  0xd5   : > { %1845 = vmatpush3.xpose.msra.mxu0 %v2231_v11  ;;  %1908 = vmatprep.subr.mxu1 %v2211_v7  ;;  %v2478_v11 = vld [vmem:[%s2269_s10 + $0x58] sm:$0xff] }
  0xd6   : > { %1846 = vmatprep.subr.mxu0 %v2226_v10  ;;  %1909 = vmatpush3.msra.mxu1 %v2211_v7 }
  0xd7   : > { %1910 = vmatprep.subr.mxu1 %v2206_v6 }
  0xd8   : > { %1911 = vmatpush3.msra.mxu1 %v2206_v6 }
  0xd9   : > { %1847 = vmatpush3.xpose.msra.mxu0 %v2226_v10  ;;  %1912 = vmatprep.subr.mxu1 %v2201_v5  ;;  %v2473_v10 = vld [vmem:[%s2269_s10 + $0x50] sm:$0xff] }
  0xda   : > { %1848 = vmatprep.subr.mxu0 %v2221_v9  ;;  %1913 = vmatpush3.msra.mxu1 %v2201_v5 }
  0xdb   : > { %1914 = vmatprep.subr.mxu1 %v2196_v4 }
  0xdc   : > { %1915 = vmatpush3.msra.mxu1 %v2196_v4 }
  0xdd   : > { %1849 = vmatpush3.xpose.msra.mxu0 %v2221_v9  ;;  %1916 = vmatprep.subr.mxu1 %v2191_v3  ;;  %v2418_v9 = vld [vmem:[%s2269_s10 + $0x78] sm:$0xff] }
  0xde   : > { %1850 = vmatprep.subr.mxu0 %v2216_v8  ;;  %1917 = vmatpush3.msra.mxu1 %v2191_v3 }
  0xdf   : > { %1918 = vmatprep.subr.mxu1 %v2185_v2 }
  0xe0   : > { %1919 = vmatpush3.msra.mxu1 %v2185_v2 }
  0xe1   : > { %1851 = vmatpush3.xpose.msra.mxu0 %v2216_v8  ;;  %1920 = vmatprep.subr.mxu1 %v2180_v1  ;;  %v2470_v8 = vld [vmem:[%s2269_s10 + $0x48] sm:$0xff] }
  0xe2   : > { %1852 = vmatprep.subr.mxu0 %v2211_v7  ;;  %1921 = vmatpush3.msra.mxu1 %v2180_v1 }
  0xe3   : > { %1922 = vmatprep.subr.mxu1 %v2175_v0 }
  0xe4   : > { %1923 = vmatpush3.msra.mxu1 %v2175_v0 }
  0xe5   : > { %1853 = vmatpush3.xpose.msra.mxu0 %v2211_v7  ;;  %1948 = vmatprep.subr.mxu1 %v2418_v9  ;;  %v2465_v7 = vld [vmem:[%s2269_s10 + $0x40] sm:$0xff] }
  0xe6   : > { %1854 = vmatprep.subr.mxu0 %v2206_v6 }
  0xe9   : > { %1855 = vmatpush3.xpose.msra.mxu0 %v2206_v6  ;;  %v2462_v6 = vld [vmem:[%s2269_s10 + $0x38] sm:$0xff] }
  0xea   : > { %1856 = vmatprep.subr.mxu0 %v2201_v5 }
  0xed   : > { %1857 = vmatpush3.xpose.msra.mxu0 %v2201_v5  ;;  %v2441_v5 = vld [vmem:[%s2269_s10 + $0x10] sm:$0xff] }
  0xee   : > { %1858 = vmatprep.subr.mxu0 %v2196_v4 }
  0xf1   : > { %1859 = vmatpush3.xpose.msra.mxu0 %v2196_v4  ;;  %v2438_v4 = vld [vmem:[%s2269_s10 + $0x8] sm:$0xff] }
  0xf2   : > { %1860 = vmatprep.subr.mxu0 %v2191_v3 }
  0xf5   : > { %1861 = vmatpush3.xpose.msra.mxu0 %v2191_v3  ;;  %v2449_v3 = vld [vmem:[%s2269_s10 + $0x20] sm:$0xff] }
  0xf6   : > { %1862 = vmatprep.subr.mxu0 %v2185_v2 }
  0xf9   : > { %1863 = vmatpush3.xpose.msra.mxu0 %v2185_v2  ;;  %v2446_v2 = vld [vmem:[%s2269_s10 + $0x18] sm:$0xff] }
  0xfa   : > { %1864 = vmatprep.subr.mxu0 %v2180_v1 }
  0xfd   : > { %1865 = vmatpush3.xpose.msra.mxu0 %v2180_v1  ;;  %v2457_v1 = vld [vmem:[%s2269_s10 + $0x30] sm:$0xff] }
  0xfe   : > { %1866 = vmatprep.subr.mxu0 %v2175_v0 }
 0x101   : > { %1867 = vmatpush3.xpose.msra.mxu0 %v2175_v0  ;;  %v2454_v0 = vld [vmem:[%s2269_s10 + $0x28] sm:$0xff] }
 0x104   : > { %1869 = vmatmul.mubr.f32.vlgmr.msra.gmra.mxu0 %v2438_v4 }
 0x105   : > { %1871 = vmatprep.mubr.f32.mxu0 %v2441_v5 }
 0x108   : > { %1872 = vmatmul.mubr.f32.gmra.mxu0 %v2446_v2 }
 0x109   : > { %1874 = vmatprep.mubr.f32.mxu0 %v2449_v3 }
 0x10c   : > { %1875 = vmatmul.mubr.f32.gmra.mxu0 %v2454_v0 }
 0x10d   : > { %1877 = vmatprep.mubr.f32.mxu0 %v2457_v1 }
 0x110   : > { %1878 = vmatmul.mubr.f32.gmra.mxu0 %v2462_v6 }
 0x111   : > { %1880 = vmatprep.mubr.f32.mxu0 %v2465_v7 }
 0x114   : > { %1881 = vmatmul.mubr.f32.gmra.mxu0 %v2470_v8 }
 0x115   : > { %1883 = vmatprep.mubr.f32.mxu0 %v2473_v10 }
 0x118   : > { %1884 = vmatmul.mubr.f32.gmra.mxu0 %v2478_v11 }
 0x119   : > { %1886 = vmatprep.mubr.f32.mxu0 %v2481_v12 }
 0x11c   : > { %1887 = vmatmul.mubr.f32.gmra.mxu0 %v2486_v13 }
 0x11d   : > { %1889 = vmatprep.mubr.f32.mxu0 %v2489_v14 }
 0x120   : > { %1890 = vmatmul.mubr.f32.gmra.mxu0 %v2418_v9 }
 0x1c4   : > { %v1870_v35 = vpop.f32.mrf.mxu0 }
 0x1c5   : > { %v671_v22 = vmul.f32 2.0, %v1870_v35 }
 0x1c6   : > { %v590_v20 = vpop.f32.mrf.mxu0 }
 0x1c7   : > { %v670_v23 = vmul.f32 2.0, %v590_v20  ;;  %v693_v31 = vsub.f32 %v2496_v25, %v671_v22 }
 0x1c8   : > { %v1873_v24 = vpop.f32.mrf.mxu0 }
 0x1c9   : > { %v692_v26 = vsub.f32 %v2496_v25, %v670_v23  ;;  %v673_v28 = vmul.f32 2.0, %v1873_v24  ;;  %v2509_v39 = vsel %vm710_vm15, %v693_v31, 1e+30 }
 0x1ca   : > { %v600_v27 = vpop.f32.mrf.mxu0 }
 0x1cb   : > { %v672_v29 = vmul.f32 2.0, %v600_v27  ;;  %v2502_v30 = vsel %vm710_vm15, %v692_v26, 1e+30  ;;  %v695_v41 = vsub.f32 %v2496_v25, %v673_v28 }
 0x1cc   : > { %727 = vmin.xlane.f32.xlu0 %v2502_v30  ;;  %v1876_v32 = vpop.f32.mrf.mxu0 }
 0x1cd   : > { %v675_v33 = vmul.f32 2.0, %v1876_v32  ;;  %v694_v36 = vsub.f32 %v2496_v25, %v672_v29  ;;  %v2522_v48 = vsel %vm710_vm15, %v695_v41, 1e+30 }
 0x1ce   : > { %v610_v37 = vpop.f32.mrf.mxu0 }
 0x1cf   : > { %v674_v38 = vmul.f32 2.0, %v610_v37  ;;  %v2513_v40 = vsel %vm710_vm15, %v694_v36, 1e+30  ;;  %v697_v45 = vsub.f32 %v2496_v25, %v675_v33 }
 0x1d0   : > { %729 = vmin.xlane.f32.xlu0 %v2509_v39  ;;  %731 = vmin.xlane.f32.xlu1 %v2513_v40  ;;  %v1879_v42 = vpop.f32.mrf.mxu0 }
 0x1d1   : > { %v677_v43 = vmul.f32 2.0, %v1879_v42  ;;  %v696_v44 = vsub.f32 %v2496_v25, %v674_v38  ;;  %v2532_v52 = vsel %vm710_vm15, %v697_v45, 1e+30 }
 0x1d2   : > { %v620_v46 = vpop.f32.mrf.mxu0 }
 0x1d3   : > { %v676_v47 = vmul.f32 2.0, %v620_v46  ;;  %v2526_v49 = vsel %vm710_vm15, %v696_v44, 1e+30  ;;  %v699_v54 = vsub.f32 %v2496_v25, %v677_v43 }
 0x1d4   : > { %733 = vmin.xlane.f32.xlu1 %v2522_v48  ;;  %735 = vmin.xlane.f32.xlu0 %v2526_v49  ;;  %v1882_v50 = vpop.f32.mrf.mxu0 }
 0x1d5   : > { %v679_v51 = vmul.f32 2.0, %v1882_v50  ;;  %v698_v53 = vsub.f32 %v2496_v25, %v676_v47  ;;  %v2544_v60 = vsel %vm710_vm15, %v699_v54, 1e+30 }
 0x1d6   : > { %v630_v55 = vpop.f32.mrf.mxu0 }
 0x1d7   : > { %v678_v56 = vmul.f32 2.0, %v630_v55  ;;  %v2538_v57 = vsel %vm710_vm15, %v698_v53, 1e+30  ;;  %v701_v61 = vsub.f32 %v2496_v25, %v679_v51 }
 0x1d8   : > { %737 = vmin.xlane.f32.xlu1 %v2532_v52  ;;  %739 = vmin.xlane.f32.xlu0 %v2538_v57  ;;  %v1885_v58 = vpop.f32.mrf.mxu0 }
 0x1d9   : > { %v681_v59 = vmul.f32 2.0, %v1885_v58  ;;  %v700_v34 = vsub.f32 %v2496_v25, %v678_v56  ;;  %v2556_v19 = vsel %vm710_vm15, %v701_v61, 1e+30 }
 0x1da   : > { %v640_v62 = vpop.f32.mrf.mxu0 }
 0x1db   : > { %v680_v63 = vmul.f32 2.0, %v640_v62  ;;  %v2550_v16 = vsel %vm710_vm15, %v700_v34, 1e+30  ;;  %v703_v35 = vsub.f32 %v2496_v25, %v681_v59 }
 0x1dc   : > { %741 = vmin.xlane.f32.xlu1 %v2544_v60  ;;  %743 = vmin.xlane.f32.xlu0 %v2550_v16  ;;  %v1888_v17 = vpop.f32.mrf.mxu0 }
 0x1dd   : > { %v683_v18 = vmul.f32 2.0, %v1888_v17  ;;  %v702_v15 = vsub.f32 %v2496_v25, %v680_v63  ;;  %v2568_v27 = vsel %vm710_vm15, %v703_v35, 1e+30 }
 0x1de   : > { %v650_v20 = vpop.f32.mrf.mxu0 }
 0x1df   : > { %v682_v22 = vmul.f32 2.0, %v650_v20  ;;  %v2562_v23 = vsel %vm710_vm15, %v702_v15, 1e+30  ;;  %v705_v29 = vsub.f32 %v2496_v25, %v683_v18 }
 0x1e0   : > { %745 = vmin.xlane.f32.xlu1 %v2556_v19  ;;  %747 = vmin.xlane.f32.xlu0 %v2562_v23  ;;  %v1891_v24 = vpop.f32.mrf.mxu0 }
 0x1e1   : > { %v685_v26 = vmul.f32 2.0, %v1891_v24  ;;  %v704_v28 = vsub.f32 %v2496_v25, %v682_v22  ;;  %v2581_v37 = vsel %vm710_vm15, %v705_v29, 1e+30 }
 0x1e2   : > { %v660_v31 = vpop.f32.mrf.mxu0 }
 0x1e3   : > { %v684_v32 = vmul.f32 2.0, %v660_v31  ;;  %v2574_v33 = vsel %vm710_vm15, %v704_v28, 1e+30  ;;  %v707_v38 = vsub.f32 %v2496_v25, %v685_v26 }
 0x1e4   : > { %749 = vmin.xlane.f32.xlu1 %v2568_v27  ;;  %751 = vmin.xlane.f32.xlu0 %v2574_v33 }
 0x1e5   : > { %v706_v36 = vsub.f32 %v2496_v25, %v684_v32  ;;  %v2592_v42 = vsel %vm710_vm15, %v707_v38, 1e+30 }
 0x1e7   : > { %v2586_v41 = vsel %vm710_vm15, %v706_v36, 1e+30 }
 0x1e8   : > { %753 = vmin.xlane.f32.xlu1 %v2581_v37  ;;  %755 = vmin.xlane.f32.xlu0 %v2586_v41 }
 0x1ec   : > { %757 = vmin.xlane.f32.xlu1 %v2592_v42 }
 0x255   : > { %v728_v43 = vpop.xlane.xlu0 %727 }
 0x256   : > { %vm759_vm0 = vcmp.le.f32.partialorder %v2502_v30, %v728_v43 }
 0x257   : > { %v2597_v44 = vsel %vm759_vm0, %v2494_v21, 128 }
 0x258   : > { %v792_v25 = vshra.s32 %v2597_v44, 16 }
 0x259   : > { %v730_v45 = vpop.xlane.xlu0 %729  ;;  %v732_v46 = vpop.xlane.xlu1 %731 }
 0x25a   : > { %vm760_vm1 = vcmp.le.f32.partialorder %v2509_v39, %v730_v45  ;;  %vm761_vm2 = vcmp.le.f32.partialorder %v2513_v40, %v732_v46  ;;  %v2602_v47 = vcvt.s32.f32 %v792_v25 }
 0x25b   : > { %v2605_v50 = vsel %vm760_vm1, %v2494_v21, 128  ;;  %v2608_v51 = vsel %vm761_vm2, %v2494_v21, 128 }
 0x25c   : > { %795 = vmin.xlane.f32.xlu0 %v2602_v47  ;;  %v806_v30 = vshra.s32 %v2605_v50, 16  ;;  %v820_v53 = vshra.s32 %v2608_v51, 16 }
 0x25d   : > { %v734_v54 = vpop.xlane.xlu1 %733  ;;  %v736_v55 = vpop.xlane.xlu0 %735 }
 0x25e   : > { %vm762_vm3 = vcmp.le.f32.partialorder %v2522_v48, %v734_v54  ;;  %vm763_vm4 = vcmp.le.f32.partialorder %v2526_v49, %v736_v55  ;;  %v2615_v39 = vcvt.s32.f32 %v806_v30  ;;  %v2617_v40 = vcvt.s32.f32 %v820_v53 }
 0x25f   : > { %v2620_v56 = vsel %vm762_vm3, %v2494_v21, 128  ;;  %v2623_v58 = vsel %vm763_vm4, %v2494_v21, 128 }
 0x260   : > { %809 = vmin.xlane.f32.xlu1 %v2615_v39  ;;  %823 = vmin.xlane.f32.xlu0 %v2617_v40  ;;  %v834_v59 = vshra.s32 %v2620_v56, 16  ;;  %v848_v48 = vshra.s32 %v2623_v58, 16 }
 0x261   : > { %v738_v34 = vpop.xlane.xlu1 %737  ;;  %v740_v49 = vpop.xlane.xlu0 %739 }
 0x262   : > { %vm764_vm5 = vcmp.le.f32.partialorder %v2532_v52, %v738_v34  ;;  %vm765_vm6 = vcmp.le.f32.partialorder %v2538_v57, %v740_v49  ;;  %v2631_v61 = vcvt.s32.f32 %v834_v59  ;;  %v2633_v62 = vcvt.s32.f32 %v848_v48 }
 0x263   : > { %v2636_v63 = vsel %vm764_vm5, %v2494_v21, 128  ;;  %v2639_v17 = vsel %vm765_vm6, %v2494_v21, 128 }
 0x264   : > { %837 = vmin.xlane.f32.xlu1 %v2631_v61  ;;  %851 = vmin.xlane.f32.xlu0 %v2633_v62  ;;  %v862_v18 = vshra.s32 %v2636_v63, 16  ;;  %v876_v52 = vshra.s32 %v2639_v17, 16 }
 0x265   : > { %v742_v15 = vpop.xlane.xlu1 %741  ;;  %v744_v57 = vpop.xlane.xlu0 %743 }
 0x266   : > { %vm766_vm7 = vcmp.le.f32.partialorder %v2544_v60, %v742_v15  ;;  %vm767_vm8 = vcmp.le.f32.partialorder %v2550_v16, %v744_v57  ;;  %v2647_v35 = vcvt.s32.f32 %v862_v18  ;;  %v2649_v20 = vcvt.s32.f32 %v876_v52 }
 0x267   : > { %v2652_v22 = vsel %vm766_vm7, %v2494_v21, 128  ;;  %v2655_v24 = vsel %vm767_vm8, %v2494_v21, 128 }
 0x268   : > { %865 = vmin.xlane.f32.xlu1 %v2647_v35  ;;  %879 = vmin.xlane.f32.xlu0 %v2649_v20  ;;  %v890_v26 = vshra.s32 %v2652_v22, 16  ;;  %v904_v60 = vshra.s32 %v2655_v24, 16 }
 0x269   : > { %v746_v28 = vpop.xlane.xlu1 %745  ;;  %v748_v16 = vpop.xlane.xlu0 %747 }
 0x26a   : > { %vm768_vm9 = vcmp.le.f32.partialorder %v2556_v19, %v746_v28  ;;  %vm769_vm10 = vcmp.le.f32.partialorder %v2562_v23, %v748_v16  ;;  %v2663_v29 = vcvt.s32.f32 %v890_v26  ;;  %v2665_v31 = vcvt.s32.f32 %v904_v60 }
 0x26b   : > { %v2668_v32 = vsel %vm768_vm9, %v2494_v21, 128  ;;  %v2671_v36 = vsel %vm769_vm10, %v2494_v21, 128  ;;  %v791_v60 = vand.u32 65535, %v2597_v44  ;;  %v819_v28 = vand.u32 65535, %v2608_v51 }
 0x26c   : > { %893 = vmin.xlane.f32.xlu1 %v2663_v29  ;;  %907 = vmin.xlane.f32.xlu0 %v2665_v31  ;;  %v918_v38 = vshra.s32 %v2668_v32, 16  ;;  %v932_v19 = vshra.s32 %v2671_v36, 16 }
 0x26d   : > { %v750_v43 = vpop.xlane.xlu1 %749  ;;  %v752_v23 = vpop.xlane.xlu0 %751 }
 0x26e   : > { %vm770_vm11 = vcmp.le.f32.partialorder %v2568_v27, %v750_v43  ;;  %vm771_vm12 = vcmp.le.f32.partialorder %v2574_v33, %v752_v23  ;;  %v2679_v25 = vcvt.s32.f32 %v918_v38  ;;  %v2681_v45 = vcvt.s32.f32 %v932_v19 }
 0x26f   : > { %v2684_v46 = vsel %vm770_vm11, %v2494_v21, 128  ;;  %v2687_v30 = vsel %vm771_vm12, %v2494_v21, 128  ;;  %v793_v38 = vcvt.s32.f32 %v791_v60  ;;  %v833_v43 = vand.u32 65535, %v2620_v56 }
 0x270   : > { %921 = vmin.xlane.f32.xlu1 %v2679_v25  ;;  %935 = vmin.xlane.f32.xlu0 %v2681_v45  ;;  %v946_v53 = vshra.s32 %v2684_v46, 16  ;;  %v960_v27 = vshra.s32 %v2687_v30, 16  ;;  %v847_v23 = vand.u32 65535, %v2623_v58  ;;  %v861_v56 = vand.u32 65535, %v2636_v63 }
 0x271   : > { %v754_v54 = vpop.xlane.xlu1 %753  ;;  %v756_v33 = vpop.xlane.xlu0 %755  ;;  %v875_v58 = vand.u32 65535, %v2639_v17  ;;  %v889_v63 = vand.u32 65535, %v2652_v22  ;;  %v903_v17 = vand.u32 65535, %v2655_v24  ;;  %v917_v22 = vand.u32 65535, %v2668_v32 }
 0x272   : > { %vm772_vm13 = vcmp.le.f32.partialorder %v2581_v37, %v754_v54  ;;  %vm773_vm14 = vcmp.le.f32.partialorder %v2586_v41, %v756_v33  ;;  %v2695_v55 = vcvt.s32.f32 %v946_v53  ;;  %v2697_v59 = vcvt.s32.f32 %v960_v27 }
 0x273   : > { %v2700_v48 = vsel %vm772_vm13, %v2494_v21, 128  ;;  %v2703_v34 = vsel %vm773_vm14, %v2494_v21, 128  ;;  %v863_v60 = vcvt.s32.f32 %v861_v56  ;;  %v931_v24 = vand.u32 65535, %v2671_v36 }
 0x274   : > { %949 = vmin.xlane.f32.xlu1 %v2695_v55  ;;  %963 = vmin.xlane.f32.xlu0 %v2697_v59  ;;  %v974_v49 = vshra.s32 %v2700_v48, 16  ;;  %v988_v37 = vshra.s32 %v2703_v34, 16  ;;  %v945_v32 = vand.u32 65535, %v2684_v46  ;;  %v959_v36 = vand.u32 65535, %v2687_v30 }
 0x275   : > { %v758_v18 = vpop.xlane.xlu1 %757  ;;  %v973_v46 = vand.u32 65535, %v2700_v48  ;;  %v987_v30 = vand.u32 65535, %v2703_v34 }
 0x276   : > { %vm774_vm15 = vcmp.le.f32.partialorder %v2592_v42, %v758_v18  ;;  %v2710_v41 = vcvt.s32.f32 %v974_v49  ;;  %v2712_v52 = vcvt.s32.f32 %v988_v37  ;;  %v805_v42 = vand.u32 65535, %v2605_v50 }
 0x277   : > { %v2715_v15 = vsel %vm774_vm15, %v2494_v21, 128  ;;  %v821_v50 = vcvt.s32.f32 %v819_v28  ;;  %v835_v49 = vcvt.s32.f32 %v833_v43  ;;  %v849_v37 = vcvt.s32.f32 %v847_v23 }
 0x278   : > { %977 = vmin.xlane.f32.xlu1 %v2710_v41  ;;  %991 = vmin.xlane.f32.xlu0 %v2712_v52  ;;  %v1002_v57 = vshra.s32 %v2715_v15, 16  ;;  %v807_v44 = vcvt.s32.f32 %v805_v42  ;;  %v877_v42 = vcvt.s32.f32 %v875_v58  ;;  %v905_v43 = vcvt.s32.f32 %v903_v17 }
 0x279   : > { %v947_v58 = vcvt.s32.f32 %v945_v32  ;;  %v1001_v48 = vand.u32 65535, %v2715_v15 }
 0x27a   : > { %v2720_v26 = vcvt.s32.f32 %v1002_v57 }
 0x27b   : > { %v1003_v17 = vcvt.s32.f32 %v1001_v48 }
 0x27c   : > { %1005 = vmin.xlane.f32.xlu1 %v2720_v26 }
 0x2e5   : > { %v2726_v16 = vpop.xlane.xlu0 %795 }
 0x2e6   : > { %vm797_vm0 = vcmp.eq.f32.partialorder %v2602_v47, %v2726_v16 }
 0x2e7   : > { %v798_v19 = vsel %vm797_vm0, %v793_v38, inf }
 0x2e8   : > { %799 = vmin.xlane.f32.xlu0 %v798_v19  ;;  %v891_v19 = vcvt.s32.f32 %v889_v63 }
 0x2e9   : > { %v2732_v53 = vpop.xlane.xlu1 %809  ;;  %v2734_v27 = vpop.xlane.xlu0 %823 }
 0x2ea   : > { %vm811_vm1 = vcmp.eq.f32.partialorder %v2615_v39, %v2732_v53  ;;  %vm825_vm2 = vcmp.eq.f32.partialorder %v2617_v40, %v2734_v27 }
 0x2eb   : > { %v812_v51 = vsel %vm811_vm1, %v807_v44, inf  ;;  %v826_v47 = vsel %vm825_vm2, %v821_v50, inf  ;;  %v919_v50 = vcvt.s32.f32 %v917_v22 }
 0x2ec   : > { %813 = vmin.xlane.f32.xlu1 %v812_v51  ;;  %827 = vmin.xlane.f32.xlu0 %v826_v47  ;;  %v933_v51 = vcvt.s32.f32 %v931_v24 }
 0x2ed   : > { %v2742_v54 = vpop.xlane.xlu1 %837  ;;  %v2744_v33 = vpop.xlane.xlu0 %851 }
 0x2ee   : > { %vm839_vm3 = vcmp.eq.f32.partialorder %v2631_v61, %v2742_v54  ;;  %vm853_vm4 = vcmp.eq.f32.partialorder %v2633_v62, %v2744_v33 }
 0x2ef   : > { %v840_v39 = vsel %vm839_vm3, %v835_v49, inf  ;;  %v854_v40 = vsel %vm853_vm4, %v849_v37, inf  ;;  %v961_v49 = vcvt.s32.f32 %v959_v36 }
 0x2f0   : > { %841 = vmin.xlane.f32.xlu1 %v840_v39  ;;  %855 = vmin.xlane.f32.xlu0 %v854_v40  ;;  %v975_v39 = vcvt.s32.f32 %v973_v46  ;;  %v989_v40 = vcvt.s32.f32 %v987_v30 }
 0x2f1   : > { %v2752_v18 = vpop.xlane.xlu1 %865  ;;  %v2754_v57 = vpop.xlane.xlu0 %879 }
 0x2f2   : > { %vm867_vm5 = vcmp.eq.f32.partialorder %v2647_v35, %v2752_v18  ;;  %vm881_vm6 = vcmp.eq.f32.partialorder %v2649_v20, %v2754_v57 }
 0x2f3   : > { %v868_v61 = vsel %vm867_vm5, %v863_v60, inf  ;;  %v882_v62 = vsel %vm881_vm6, %v877_v42, inf  ;;  %v802_v60 = vcvt.f32.s32 %v2726_v16  ;;  %v816_v42 = vcvt.f32.s32 %v2732_v53 }
 0x2f4   : > { %869 = vmin.xlane.f32.xlu1 %v868_v61  ;;  %883 = vmin.xlane.f32.xlu0 %v882_v62  ;;  %v2104_v16 = vmov 1.0   ;;  %v2105_v53 = vmov 0.0  }
 0x2f5   : > { %v2762_v28 = vpop.xlane.xlu1 %893  ;;  %v2764_v38 = vpop.xlane.xlu0 %907  ;;  %v803_v61 = vshll.u32 %v802_v60, 16  ;;  %v817_v24 = vshll.u32 %v816_v42, 16 }
 0x2f6   : > { %vm895_vm7 = vcmp.eq.f32.partialorder %v2663_v29, %v2762_v28  ;;  %vm909_vm8 = vcmp.eq.f32.partialorder %v2665_v31, %v2764_v38 }
 0x2f7   : > { %v896_v35 = vsel %vm895_vm7, %v891_v19, inf  ;;  %v910_v20 = vsel %vm909_vm8, %v905_v43, inf  ;;  %v844_v19 = vcvt.f32.s32 %v2742_v54  ;;  %v858_v43 = vcvt.f32.s32 %v2744_v33 }
 0x2f8   : > { %897 = vmin.xlane.f32.xlu1 %v896_v35  ;;  %911 = vmin.xlane.f32.xlu0 %v910_v20 }
 0x2f9   : > { %v2772_v23 = vpop.xlane.xlu1 %921  ;;  %v2774_v44 = vpop.xlane.xlu0 %935  ;;  %v845_v54 = vshll.u32 %v844_v19, 16  ;;  %v859_v33 = vshll.u32 %v858_v43, 16 }
 0x2fa   : > { %vm923_vm9 = vcmp.eq.f32.partialorder %v2679_v25, %v2772_v23  ;;  %vm937_vm10 = vcmp.eq.f32.partialorder %v2681_v45, %v2774_v44 }
 0x2fb   : > { %v924_v29 = vsel %vm923_vm9, %v919_v50, inf  ;;  %v938_v31 = vsel %vm937_vm10, %v933_v51, inf  ;;  %v872_v50 = vcvt.f32.s32 %v2752_v18 }
 0x2fc   : > { %925 = vmin.xlane.f32.xlu1 %v924_v29  ;;  %939 = vmin.xlane.f32.xlu0 %v938_v31  ;;  %v886_v31 = vcvt.f32.s32 %v2754_v57 }
 0x2fd   : > { %v2782_v47 = vpop.xlane.xlu1 %949  ;;  %v2784_v56 = vpop.xlane.xlu0 %963  ;;  %v873_v18 = vshll.u32 %v872_v50, 16 }
 0x2fe   : > { %vm951_vm11 = vcmp.eq.f32.partialorder %v2695_v55, %v2782_v47  ;;  %vm965_vm12 = vcmp.eq.f32.partialorder %v2697_v59, %v2784_v56  ;;  %v887_v57 = vshll.u32 %v886_v31, 16 }
 0x2ff   : > { %v952_v25 = vsel %vm951_vm11, %v947_v58, inf  ;;  %v966_v45 = vsel %vm965_vm12, %v961_v49, inf }
 0x300   : > { %953 = vmin.xlane.f32.xlu1 %v952_v25  ;;  %967 = vmin.xlane.f32.xlu0 %v966_v45 }
 0x301   : > { %v2791_v37 = vpop.xlane.xlu1 %977  ;;  %v2793_v34 = vpop.xlane.xlu0 %991 }
 0x302   : > { %vm979_vm13 = vcmp.eq.f32.partialorder %v2710_v41, %v2791_v37  ;;  %vm993_vm14 = vcmp.eq.f32.partialorder %v2712_v52, %v2793_v34  ;;  %v830_v52 = vcvt.f32.s32 %v2734_v27 }
 0x303   : > { %v980_v55 = vsel %vm979_vm13, %v975_v39, inf  ;;  %v994_v59 = vsel %vm993_vm14, %v989_v40, inf  ;;  %v900_v40 = vcvt.f32.s32 %v2762_v28 }
 0x304   : > { %981 = vmin.xlane.f32.xlu1 %v980_v55  ;;  %995 = vmin.xlane.f32.xlu0 %v994_v59  ;;  %v914_v55 = vcvt.f32.s32 %v2764_v38  ;;  %v928_v38 = vcvt.f32.s32 %v2772_v23 }
 0x305   : > { %v2799_v63 = vpop.xlane.xlu1 %1005 }
 0x306   : > { %vm1007_vm15 = vcmp.eq.f32.partialorder %v2720_v26, %v2799_v63  ;;  %v831_v26 = vshll.u32 %v830_v52, 16 }
 0x307   : > { %v1008_v15 = vsel %vm1007_vm15, %v1003_v17, inf }
 0x308   : > { %1009 = vmin.xlane.f32.xlu1 %v1008_v15 }
 0x371   : > { %v800_v41 = vpop.xlane.xlu0 %799 }
 0x372   : > { %v801_v62 = vcvt.f32.s32 %v800_v41 }
 0x374   : > { %v804_v22 = vadd.s32 %v803_v61, %v801_v62  ;;  %v901_v62 = vshll.u32 %v900_v40, 16 }
 0x375   : > { %v814_v35 = vpop.xlane.xlu1 %813  ;;  %v828_v20 = vpop.xlane.xlu0 %827 }
 0x376   : > { %v815_v32 = vcvt.f32.s32 %v814_v35  ;;  %v829_v36 = vcvt.f32.s32 %v828_v20  ;;  %vm1015_vm0 = vcmp.eq.s32.totalorder %v2494_v21, %v804_v22  ;;  %v915_v22 = vshll.u32 %v914_v55, 16 }
 0x377   : > { %1924 = vmatprep.mubr.msk.f32.mxu1 %vm1015_vm0, %v2104_v16  ;;  %v1705_v27 = vsel %vm1015_vm0, 1.0, %v2105_v53 }
 0x378   : > { %v818_v51 = vadd.s32 %v817_v24, %v815_v32  ;;  %v832_v29 = vadd.s32 %v831_v26, %v829_v36  ;;  %1264 = vxpose.xlu0.b32.start [1/16] %v1705_v27, 128  ;;  %v942_v24 = vcvt.f32.s32 %v2774_v44  ;;  %v929_v44 = vshll.u32 %v928_v38, 16 }
 0x379   : > { %v842_v46 = vpop.xlane.xlu1 %841  ;;  %v856_v30 = vpop.xlane.xlu0 %855  ;;  %v956_v36 = vcvt.f32.s32 %v2782_v47 }
 0x37a   : > { %vm1016_vm1 = vcmp.eq.s32.totalorder %v2494_v21, %v818_v51  ;;  %v843_v58 = vcvt.f32.s32 %v842_v46  ;;  %v857_v49 = vcvt.f32.s32 %v856_v30  ;;  %vm1017_vm2 = vcmp.eq.s32.totalorder %v2494_v21, %v832_v29 }
 0x37b   : > { %v1706_v25 = vsel %vm1016_vm1, 1.0, %v2105_v53  ;;  %1925 = vmatmul.mubr.msk.f32.vlgmr.msra.gmra.mxu1 %vm1016_vm1, %v2104_v16  ;;  %v1707_v15 = vsel %vm1017_vm2, 1.0, %v2105_v53  ;;  %v970_v51 = vcvt.f32.s32 %v2784_v56 }
 0x37c   : > { %v1225_v45 = vadd.f32 %v1706_v25, %v1705_v27  ;;  %v846_v48 = vadd.s32 %v845_v54, %v843_v58  ;;  %v860_v39 = vadd.s32 %v859_v33, %v857_v49  ;;  %1265 = vxpose.xlu0.b32.cont [2/16] %v1706_v25, 128  ;;  %1927 = vmatprep.mubr.msk.f32.mxu1 %vm1017_vm2, %v2104_v16  ;;  %v957_v58 = vshll.u32 %v956_v36, 16 }
 0x37d   : > { %v870_v59 = vpop.xlane.xlu1 %869  ;;  %v884_v17 = vpop.xlane.xlu0 %883  ;;  %1949 = vmatpush3.msra.mxu1 %v2418_v9  ;;  %v984_v49 = vcvt.f32.s32 %v2791_v37 }
 0x37e   : > { %v871_v60 = vcvt.f32.s32 %v870_v59  ;;  %v885_v42 = vcvt.f32.s32 %v884_v17  ;;  %vm1018_vm3 = vcmp.eq.s32.totalorder %v2494_v21, %v846_v48  ;;  %v1226_v41 = vadd.f32 %v1707_v15, %v1225_v45  ;;  %1950 = vmatprep.subr.mxu1 %v2489_v14 }
 0x37f   : > { %1928 = vmatmul.mubr.msk.f32.gmra.mxu1 %vm1018_vm3, %v2104_v16  ;;  %vm1019_vm4 = vcmp.eq.s32.totalorder %v2494_v21, %v860_v39  ;;  %v1708_v28 = vsel %vm1018_vm3, 1.0, %v2105_v53  ;;  %v998_v45 = vcvt.f32.s32 %v2793_v34  ;;  %v985_v17 = vshll.u32 %v984_v49, 16 }
 0x380   : > { %v874_v61 = vadd.s32 %v873_v18, %v871_v60  ;;  %v888_v52 = vadd.s32 %v887_v57, %v885_v42  ;;  %1266 = vxpose.xlu0.b32.cont [3/16] %v1707_v15, 128  ;;  %1930 = vmatprep.mubr.msk.f32.mxu1 %vm1019_vm4, %v2104_v16  ;;  %v1227_v9 = vadd.f32 %v1708_v28, %v1226_v41  ;;  %v1709_v35 = vsel %vm1019_vm4, 1.0, %v2105_v53 }
 0x381   : > { %v898_v19 = vpop.xlane.xlu1 %897  ;;  %v912_v43 = vpop.xlane.xlu0 %911  ;;  %1951 = vmatpush3.msra.mxu1 %v2489_v14  ;;  %v943_v14 = vshll.u32 %v942_v24, 16  ;;  %v1012_v42 = vcvt.f32.s32 %v2799_v63 }
 0x382   : > { %v899_v20 = vcvt.f32.s32 %v898_v19  ;;  %v913_v26 = vcvt.f32.s32 %v912_v43  ;;  %vm1020_vm5 = vcmp.eq.s32.totalorder %v2494_v21, %v874_v61  ;;  %vm1021_vm6 = vcmp.eq.s32.totalorder %v2494_v21, %v888_v52  ;;  %1952 = vmatprep.subr.mxu1 %v2486_v13 }
 0x383   : > { %1931 = vmatmul.mubr.msk.f32.gmra.mxu1 %vm1020_vm5, %v2104_v16  ;;  %v1228_v23 = vadd.f32 %v1709_v35, %v1227_v9  ;;  %v1710_v32 = vsel %vm1020_vm5, 1.0, %v2105_v53  ;;  %v1711_v31 = vsel %vm1021_vm6, 1.0, %v2105_v53 }
 0x384   : > { %v902_v27 = vadd.s32 %v901_v62, %v899_v20  ;;  %v916_v50 = vadd.s32 %v915_v22, %v913_v26  ;;  %1267 = vxpose.xlu0.b32.cont [4/16] %v1708_v28, 128  ;;  %1933 = vmatprep.mubr.msk.f32.mxu1 %vm1021_vm6, %v2104_v16 }
 0x385   : > { %v926_v29 = vpop.xlane.xlu1 %925  ;;  %v940_v54 = vpop.xlane.xlu0 %939  ;;  %v1229_v33 = vadd.f32 %v1710_v32, %v1228_v23  ;;  %1953 = vmatpush3.msra.mxu1 %v2486_v13  ;;  %v971_v13 = vshll.u32 %v970_v51, 16 }
 0x386   : > { %v927_v47 = vcvt.f32.s32 %v926_v29  ;;  %v941_v46 = vcvt.f32.s32 %v940_v54  ;;  %vm1022_vm7 = vcmp.eq.s32.totalorder %v2494_v21, %v902_v27  ;;  %vm1023_vm8 = vcmp.eq.s32.totalorder %v2494_v21, %v916_v50  ;;  %1954 = vmatprep.subr.mxu1 %v2481_v12 }
 0x387   : > { %1934 = vmatmul.mubr.msk.f32.gmra.mxu1 %vm1022_vm7, %v2104_v16  ;;  %v1230_v56 = vadd.f32 %v1711_v31, %v1229_v33  ;;  %v1712_v30 = vsel %vm1022_vm7, 1.0, %v2105_v53  ;;  %v1713_v40 = vsel %vm1023_vm8, 1.0, %v2105_v53 }
 0x388   : > { %v930_v25 = vadd.s32 %v929_v44, %v927_v47  ;;  %v944_v18 = vadd.s32 %v943_v14, %v941_v46  ;;  %1268 = vxpose.xlu0.b32.cont [5/16] %v1709_v35, 128  ;;  %1936 = vmatprep.mubr.msk.f32.mxu1 %vm1023_vm8, %v2104_v16 }
 0x389   : > { %v954_v48 = vpop.xlane.xlu1 %953  ;;  %v968_v39 = vpop.xlane.xlu0 %967  ;;  %v1231_v57 = vadd.f32 %v1712_v30, %v1230_v56  ;;  %1955 = vmatpush3.msra.mxu1 %v2481_v12  ;;  %v999_v12 = vshll.u32 %v998_v45, 16  ;;  %v2048_v45 = vld [vmem:[%s2269_s10 + $0x8] sm:$0xff] }
 0x38a   : > { %v955_v37 = vcvt.f32.s32 %v954_v48  ;;  %v969_v55 = vcvt.f32.s32 %v968_v39  ;;  %vm1024_vm9 = vcmp.eq.s32.totalorder %v2494_v21, %v930_v25  ;;  %vm1025_vm10 = vcmp.eq.s32.totalorder %v2494_v21, %v944_v18  ;;  %1956 = vmatprep.subr.mxu1 %v2478_v11 }
 0x38b   : > { %1937 = vmatmul.mubr.msk.f32.gmra.mxu1 %vm1024_vm9, %v2104_v16  ;;  %v1232_v34 = vadd.f32 %v1713_v40, %v1231_v57  ;;  %v1714_v59 = vsel %vm1024_vm9, 1.0, %v2105_v53  ;;  %v1715_v61 = vsel %vm1025_vm10, 1.0, %v2105_v53 }
 0x38c   : > { %v958_v15 = vadd.s32 %v957_v58, %v955_v37  ;;  %v972_v60 = vadd.s32 %v971_v13, %v969_v55  ;;  %1269 = vxpose.xlu0.b32.cont [6/16] %v1710_v32, 128  ;;  %1939 = vmatprep.mubr.msk.f32.mxu1 %vm1025_vm10, %v2104_v16 }
 0x38d   : > { %v982_v41 = vpop.xlane.xlu1 %981  ;;  %v996_v28 = vpop.xlane.xlu0 %995  ;;  %v1233_v38 = vadd.f32 %v1714_v59, %v1232_v34  ;;  %1957 = vmatpush3.msra.mxu1 %v2478_v11  ;;  %v1013_v11 = vshll.u32 %v1012_v42, 16  ;;  %v2049_v34 = vld [vmem:[%s2269_s10 + $0x18] sm:$0xff] }
 0x38e   : > { %v983_v52 = vcvt.f32.s32 %v982_v41  ;;  %v997_v9 = vcvt.f32.s32 %v996_v28  ;;  %vm1026_vm11 = vcmp.eq.s32.totalorder %v2494_v21, %v958_v15  ;;  %vm1027_vm12 = vcmp.eq.s32.totalorder %v2494_v21, %v972_v60  ;;  %1958 = vmatprep.subr.mxu1 %v2473_v10 }
 0x38f   : > { %1940 = vmatmul.mubr.msk.f32.gmra.mxu1 %vm1026_vm11, %v2104_v16  ;;  %v1234_v62 = vadd.f32 %v1715_v61, %v1233_v38  ;;  %v1716_v63 = vsel %vm1026_vm11, 1.0, %v2105_v53  ;;  %v1717_v20 = vsel %vm1027_vm12, 1.0, %v2105_v53 }
 0x390   : > { %v986_v22 = vadd.s32 %v985_v17, %v983_v52  ;;  %v1000_v24 = vadd.s32 %v999_v12, %v997_v9  ;;  %1270 = vxpose.xlu0.b32.cont [7/16] %v1711_v31, 128  ;;  %1942 = vmatprep.mubr.msk.f32.mxu1 %vm1027_vm12, %v2104_v16  ;;  %v2050_v17 = vld [vmem:[%s2269_s10 + $0x10] sm:$0xff]  ;;  %v2052_v9 = vld [vmem:[%s2269_s10 + $0x20] sm:$0xff] }
 0x391   : > { %v1010_v19 = vpop.xlane.xlu1 %1009  ;;  %v1235_v43 = vadd.f32 %v1716_v63, %v1234_v62  ;;  %1959 = vmatpush3.msra.mxu1 %v2473_v10 }
 0x392   : > { %v1011_v35 = vcvt.f32.s32 %v1010_v19  ;;  %vm1028_vm13 = vcmp.eq.s32.totalorder %v2494_v21, %v986_v22  ;;  %vm1029_vm14 = vcmp.eq.s32.totalorder %v2494_v21, %v1000_v24  ;;  %1960 = vmatprep.subr.mxu1 %v2470_v8 }
 0x393   : > { %1943 = vmatmul.mubr.msk.f32.gmra.mxu1 %vm1028_vm13, %v2104_v16  ;;  %v1236_v26 = vadd.f32 %v1717_v20, %v1235_v43  ;;  %v1718_v23 = vsel %vm1028_vm13, 1.0, %v2105_v53  ;;  %v1719_v44 = vsel %vm1029_vm14, 1.0, %v2105_v53 }
 0x394   : > { %v1014_v32 = vadd.s32 %v1013_v11, %v1011_v35  ;;  %1271 = vxpose.xlu0.b32.cont [8/16] %v1712_v30, 128  ;;  %1945 = vmatprep.mubr.msk.f32.mxu1 %vm1029_vm14, %v2104_v16  ;;  %v2053_v35 = vld [vmem:[%s2269_s10 + $0x38] sm:$0xff] }
 0x395   : > { %v1237_v10 = vadd.f32 %v1718_v23, %v1236_v26  ;;  %1961 = vmatpush3.msra.mxu1 %v2470_v8  ;;  %v2054_v26 = vld [vmem:[%s2269_s10 + $0x30] sm:$0xff] }
 0x396   : > { %vm1030_vm15 = vcmp.eq.s32.totalorder %v2494_v21, %v1014_v32  ;;  %1962 = vmatprep.subr.mxu1 %v2465_v7 }
 0x397   : > { %1946 = vmatmul.mubr.msk.f32.gmra.mxu1 %vm1030_vm15, %v2104_v16  ;;  %v1238_v36 = vadd.f32 %v1719_v44, %v1237_v10  ;;  %v1720_v27 = vsel %vm1030_vm15, 1.0, %v2105_v53 }
 0x398   : > { %1272 = vxpose.xlu0.b32.cont [9/16] %v1713_v40, 128  ;;  %1963 = vmatpush3.msra.mxu1 %v2465_v7 }
 0x399   : > { %v1239_v50 = vadd.f32 %v1720_v27, %v1238_v36  ;;  %1964 = vmatprep.subr.mxu1 %v2462_v6 }
 0x39a   : > { %1965 = vmatpush3.msra.mxu1 %v2462_v6 }
 0x39b   : > { %v1240_v8 = vrot.slane %v1239_v50, 4  ;;  %1966 = vmatprep.subr.mxu1 %v2457_v1 }
 0x39c   : > { %1273 = vxpose.xlu0.b32.cont [10/16] %v1714_v59, 128  ;;  %1967 = vmatpush3.msra.mxu1 %v2457_v1  ;;  %v1224_v1 = vld [vmem:[%s2259_s27] sm:$0x1] }
 0x39d   : > { %v1241_v21 = vadd.f32 %v1240_v8, %v1239_v50  ;;  %1968 = vmatprep.subr.mxu1 %v2454_v0  ;;  %v2055_v8 = vld [vmem:[%s2269_s10 + $0x48] sm:$0xff] }
 0x39e   : > { %1969 = vmatpush3.msra.mxu1 %v2454_v0 }
 0x39f   : > { %v1242_v16 = vrot.slane %v1241_v21, 2  ;;  %1970 = vmatprep.subr.mxu1 %v2449_v3 }
 0x3a0   : > { %1274 = vxpose.xlu0.b32.cont [11/16] %v1715_v61, 128  ;;  %1971 = vmatpush3.msra.mxu1 %v2449_v3  ;;  %v2047_v3 = vld [vmem:[%s2269_s10] sm:$0xff]  ;;  %v2051_v61 = vld [vmem:[%s2269_s10 + $0x28] sm:$0xff] }
 0x3a1   : > { %v1243_v6 = vadd.f32 %v1242_v16, %v1241_v21  ;;  %1972 = vmatprep.subr.mxu1 %v2446_v2  ;;  %v2056_v16 = vld [vmem:[%s2269_s10 + $0x40] sm:$0xff] }
 0x3a2   : > { %1973 = vmatpush3.msra.mxu1 %v2446_v2 }
 0x3a3   : > { %v1244_v7 = vrot.slane %v1243_v6, 1  ;;  %1974 = vmatprep.subr.mxu1 %v2441_v5 }
 0x3a4   : > { %1275 = vxpose.xlu0.b32.cont [12/16] %v1716_v63, 128  ;;  %1975 = vmatpush3.msra.mxu1 %v2441_v5 }
 0x3a5   : > { %v1245_v0 = vadd.f32 %v1244_v7, %v1243_v6  ;;  %1976 = vmatprep.subr.mxu1 %v2438_v4 }
 0x3a6   : > { %1977 = vmatpush3.msra.mxu1 %v2438_v4 }
 0x3a7   : > { %v1246_v53 = vadd.f32 %v1245_v0, %v1224_v1  ;;  %1978 = vmatprep.subr.mxu1 %v2047_v3 }
 0x3a8   : > { %1276 = vxpose.xlu0.b32.cont [13/16] %v1717_v20, 128  ;;  %1979 = vmatpush3.msra.mxu1 %v2047_v3 }
 0x3a9   : > { %1247 = vst [vmem:[%s2259_s27] sm:$0x1] %v1246_v53 }
 0x3ac   : > { %1277 = vxpose.xlu0.b32.cont [14/16] %v1718_v23, 128 }
 0x3b0   : > { %1278 = vxpose.xlu0.b32.cont [15/16] %v1719_v44, 128 }
 0x3b4   : > { %1279 = vxpose.xlu0.b32.end [16/16] %v1720_v27, 128 }
 0x3f4   : > { %v1280_v2 = vpop.trf.xlu0 }
 0x3f5   : > { %1980 = vmatprep.mubr.f32.mxu1 %v1280_v2 }
 0x3f8   : > { %v1281_v14 = vpop.trf.xlu0 }
 0x3f9   : > { %1981 = vmatmul.mubr.f32.vlgmr.msra.gmra.mxu1 %v1281_v14  ;;  %v2057_v14 = vld [vmem:[%s2269_s10 + $0x58] sm:$0xff] }
 0x3fc   : > { %v1282_v51 = vpop.trf.xlu0 }
 0x3fd   : > { %1983 = vmatprep.mubr.f32.mxu1 %v1282_v51 }
 0x400   : > { %v1283_v5 = vpop.trf.xlu0 }
 0x401   : > { %1984 = vmatmul.mubr.f32.gmra.mxu1 %v1283_v5  ;;  %v2058_v5 = vld [vmem:[%s2269_s10 + $0x50] sm:$0xff] }
 0x404   : > { %v1284_v29 = vpop.trf.xlu0 }
 0x405   : > { %1986 = vmatprep.mubr.f32.mxu1 %v1284_v29 }
 0x408   : > { %v1285_v4 = vpop.trf.xlu0 }
 0x409   : > { %1987 = vmatmul.mubr.f32.gmra.mxu1 %v1285_v4 }
 0x40c   : > { %v1286_v54 = vpop.trf.xlu0 }
 0x40d   : > { %1989 = vmatprep.mubr.f32.mxu1 %v1286_v54 }
 0x410   : > { %v1287_v33 = vpop.trf.xlu0 }
 0x411   : > { %1990 = vmatmul.mubr.f32.gmra.mxu1 %v1287_v33 }
 0x414   : > { %v1288_v31 = vpop.trf.xlu0 }
 0x415   : > { %1992 = vmatprep.mubr.f32.mxu1 %v1288_v31 }
 0x418   : > { %v1289_v47 = vpop.trf.xlu0 }
 0x419   : > { %1993 = vmatmul.mubr.f32.gmra.mxu1 %v1289_v47 }
 0x41c   : > { %v1290_v46 = vpop.trf.xlu0 }
 0x41d   : > { %1995 = vmatprep.mubr.f32.mxu1 %v1290_v46 }
 0x420   : > { %v1291_v56 = vpop.trf.xlu0 }
 0x421   : > { %1996 = vmatmul.mubr.f32.gmra.mxu1 %v1291_v56  ;;  %v2059_v56 = vld [vmem:[%s2269_s10 + $0x68] sm:$0xff] }
 0x424   : > { %v1292_v30 = vpop.trf.xlu0 }
 0x425   : > { %1998 = vmatprep.mubr.f32.mxu1 %v1292_v30 }
 0x428   : > { %v1293_v58 = vpop.trf.xlu0 }
 0x429   : > { %1999 = vmatmul.mubr.f32.gmra.mxu1 %v1293_v58  ;;  %v2060_v58 = vld [vmem:[%s2269_s10 + $0x60] sm:$0xff] }
 0x42c   : > { %v1294_v49 = vpop.trf.xlu0 }
 0x42d   : > { %2001 = vmatprep.mubr.f32.mxu1 %v1294_v49 }
 0x430   : > { %v1295_v25 = vpop.trf.xlu0 }
 0x431   : > { %2002 = vmatmul.mubr.f32.gmra.mxu1 %v1295_v25 }
 0x43b   : > { %v1926_v18 = vpop.f32.mrf.mxu1 }
 0x43c   : > { %1209 = vst [vmem:[%s2274_s13 + $0x8] sm:$0xff] %v1926_v18  ;;  %v1474_v48 = vsub.f32 %v2048_v45, %v1926_v18 }
 0x43d   : > { %v1129_v13 = vpop.f32.mrf.mxu1 }
 0x43e   : > { %1208 = vst [vmem:[%s2274_s13] sm:$0xff] %v1129_v13  ;;  %v1473_v39 = vsub.f32 %v2047_v3, %v1129_v13  ;;  %v1491_v55 = vmul.f32 %v1474_v48, %v1474_v48 }
 0x43f   : > { %v1929_v57 = vpop.f32.mrf.mxu1 }
 0x440   : > { %v1490_v40 = vmul.f32 %v1473_v39, %v1473_v39  ;;  %1211 = vst [vmem:[%s2274_s13 + $0x18] sm:$0xff] %v1929_v57  ;;  %v1476_v59 = vsub.f32 %v2049_v34, %v1929_v57  ;;  %v2061_v57 = vld [vmem:[%s2269_s10 + $0x78] sm:$0xff] }
 0x441   : > { %v1139_v37 = vpop.f32.mrf.mxu1 }
 0x442   : > { %1210 = vst [vmem:[%s2274_s13 + $0x10] sm:$0xff] %v1139_v37  ;;  %v1475_v15 = vsub.f32 %v2050_v17, %v1139_v37  ;;  %v1506_v12 = vadd.f32 %v1491_v55, %v1490_v40  ;;  %v1493_v28 = vmul.f32 %v1476_v59, %v1476_v59  ;;  %v2062_v37 = vld [vmem:[%s2269_s10 + $0x70] sm:$0xff] }
 0x443   : > { %v1932_v60 = vpop.f32.mrf.mxu1 }
 0x444   : > { %v1492_v42 = vmul.f32 %v1475_v15, %v1475_v15  ;;  %1213 = vst [vmem:[%s2274_s13 + $0x28] sm:$0xff] %v1932_v60  ;;  %v1478_v52 = vsub.f32 %v2051_v61, %v1932_v60  ;;  %v1489_v61 = vld [vmem:[%s2279_s17] sm:$0x1] }
 0x445   : > { %v1149_v41 = vpop.f32.mrf.mxu1 }
 0x446   : > { %v1507_v38 = vadd.f32 %v1506_v12, %v1492_v42  ;;  %1212 = vst [vmem:[%s2274_s13 + $0x20] sm:$0xff] %v1149_v41  ;;  %v1477_v62 = vsub.f32 %v2052_v9, %v1149_v41  ;;  %v1495_v19 = vmul.f32 %v1478_v52, %v1478_v52 }
 0x447   : > { %v1935_v63 = vpop.f32.mrf.mxu1 }
 0x448   : > { %v1494_v22 = vmul.f32 %v1477_v62, %v1477_v62  ;;  %v1508_v24 = vadd.f32 %v1507_v38, %v1493_v28  ;;  %1215 = vst [vmem:[%s2274_s13 + $0x38] sm:$0xff] %v1935_v63  ;;  %v1480_v20 = vsub.f32 %v2053_v35, %v1935_v63  ;;  %v1249_v62 = vld [vmem:[%s2264_s7 + $0x8] sm:$0xff] }
 0x449   : > { %v1159_v11 = vpop.f32.mrf.mxu1 }
 0x44a   : > { %v1509_v43 = vadd.f32 %v1508_v24, %v1494_v22  ;;  %1214 = vst [vmem:[%s2274_s13 + $0x30] sm:$0xff] %v1159_v11  ;;  %v1479_v23 = vsub.f32 %v2054_v26, %v1159_v11  ;;  %v1497_v27 = vmul.f32 %v1480_v20, %v1480_v20  ;;  %v1248_v22 = vld [vmem:[%s2264_s7] sm:$0xff]  ;;  %v1250_v20 = vld [vmem:[%s2264_s7 + $0x10] sm:$0xff] }
 0x44b   : > { %v1938_v32 = vpop.f32.mrf.mxu1 }
 0x44c   : > { %v1496_v10 = vmul.f32 %v1479_v23, %v1479_v23  ;;  %v1510_v44 = vadd.f32 %v1509_v43, %v1495_v19  ;;  %1217 = vst [vmem:[%s2274_s13 + $0x48] sm:$0xff] %v1938_v32  ;;  %v1482_v21 = vsub.f32 %v2055_v8, %v1938_v32  ;;  %v1251_v43 = vld [vmem:[%s2264_s7 + $0x18] sm:$0xff] }
 0x44d   : > { %v1169_v36 = vpop.f32.mrf.mxu1 }
 0x44e   : > { %v1511_v50 = vadd.f32 %v1510_v44, %v1496_v10  ;;  %1216 = vst [vmem:[%s2274_s13 + $0x40] sm:$0xff] %v1169_v36  ;;  %v1481_v6 = vsub.f32 %v2056_v16, %v1169_v36  ;;  %v1499_v3 = vmul.f32 %v1482_v21, %v1482_v21  ;;  %v1253_v10 = vld [vmem:[%s2264_s7 + $0x28] sm:$0xff]  ;;  %v1252_v36 = vld [vmem:[%s2264_s7 + $0x20] sm:$0xff]  ;;  %v1255_v21 = vld [vmem:[%s2264_s7 + $0x38] sm:$0xff] }
 0x44f   : > { %v1941_v7 = vpop.f32.mrf.mxu1 }
 0x450   : > { %v1498_v1 = vmul.f32 %v1481_v6, %v1481_v6  ;;  %v1512_v0 = vadd.f32 %v1511_v50, %v1497_v27  ;;  %1219 = vst [vmem:[%s2274_s13 + $0x58] sm:$0xff] %v1941_v7  ;;  %v1484_v51 = vsub.f32 %v2057_v14, %v1941_v7  ;;  %v1254_v6 = vld [vmem:[%s2264_s7 + $0x30] sm:$0xff] }
 0x451   : > { %v1179_v53 = vpop.f32.mrf.mxu1 }
 0x452   : > { %v1513_v2 = vadd.f32 %v1512_v0, %v1498_v1  ;;  %1218 = vst [vmem:[%s2274_s13 + $0x50] sm:$0xff] %v1179_v53  ;;  %v1483_v29 = vsub.f32 %v2058_v5, %v1179_v53  ;;  %v1501_v47 = vmul.f32 %v1484_v51, %v1484_v51  ;;  %v1257_v53 = vld [vmem:[%s2264_s7 + $0x48] sm:$0xff] }
 0x453   : > { %v1944_v4 = vpop.f32.mrf.mxu1 }
 0x454   : > { %v1500_v54 = vmul.f32 %v1483_v29, %v1483_v29  ;;  %v1514_v33 = vadd.f32 %v1513_v2, %v1499_v3  ;;  %1221 = vst [vmem:[%s2274_s13 + $0x68] sm:$0xff] %v1944_v4  ;;  %v1486_v30 = vsub.f32 %v2059_v56, %v1944_v4  ;;  %v1256_v2 = vld [vmem:[%s2264_s7 + $0x40] sm:$0xff]  ;;  %v1259_v29 = vld [vmem:[%s2264_s7 + $0x58] sm:$0xff] }
 0x455   : > { %v1189_v31 = vpop.f32.mrf.mxu1 }
 0x456   : > { %v1515_v46 = vadd.f32 %v1514_v33, %v1500_v54  ;;  %1220 = vst [vmem:[%s2274_s13 + $0x60] sm:$0xff] %v1189_v31  ;;  %v1485_v49 = vsub.f32 %v2060_v58, %v1189_v31  ;;  %v1503_v48 = vmul.f32 %v1486_v30, %v1486_v30  ;;  %v1258_v54 = vld [vmem:[%s2264_s7 + $0x50] sm:$0xff]  ;;  %v1260_v30 = vld [vmem:[%s2264_s7 + $0x60] sm:$0xff] }
 0x457   : > { %v1947_v25 = vpop.f32.mrf.mxu1 }
 0x458   : > { %v1502_v18 = vmul.f32 %v1485_v49, %v1485_v49  ;;  %v1516_v13 = vadd.f32 %v1515_v46, %v1501_v47  ;;  %1223 = vst [vmem:[%s2274_s13 + $0x78] sm:$0xff] %v1947_v25  ;;  %v1488_v40 = vsub.f32 %v2061_v57, %v1947_v25  ;;  %v1261_v46 = vld [vmem:[%s2264_s7 + $0x68] sm:$0xff] }
 0x459   : > { %v1199_v45 = vpop.f32.mrf.mxu1 }
 0x45a   : > { %v1517_v39 = vadd.f32 %v1516_v13, %v1502_v18  ;;  %1222 = vst [vmem:[%s2274_s13 + $0x70] sm:$0xff] %v1199_v45  ;;  %v1487_v55 = vsub.f32 %v2062_v37, %v1199_v45  ;;  %v1505_v17 = vmul.f32 %v1488_v40, %v1488_v40  ;;  %v1263_v18 = vld [vmem:[%s2264_s7 + $0x78] sm:$0xff]  ;;  %v1262_v45 = vld [vmem:[%s2264_s7 + $0x70] sm:$0xff] }
 0x45c   : > { %v1504_v34 = vmul.f32 %v1487_v55, %v1487_v55  ;;  %v1518_v59 = vadd.f32 %v1517_v39, %v1503_v48 }
 0x45e   : > { %v1519_v15 = vadd.f32 %v1518_v59, %v1504_v34 }
 0x460   : > { %v1520_v60 = vadd.f32 %v1519_v15, %v1505_v17 }
 0x462   : > { %v1521_v12 = vrot.slane %v1520_v60, 4 }
 0x464   : > { %v1522_v42 = vadd.f32 %v1521_v12, %v1520_v60 }
 0x466   : > { %v1523_v41 = vrot.slane %v1522_v42, 2 }
 0x468   : > { %v1524_v28 = vadd.f32 %v1523_v41, %v1522_v42 }
 0x46a   : > { %v1525_v38 = vrot.slane %v1524_v28, 1 }
 0x46c   : > { %v1526_v52 = vadd.f32 %v1525_v38, %v1524_v28 }
 0x46e   : > { %v1527_v9 = vadd.f32 %v1526_v52, %v1489_v61 }
 0x470   : > { %1528 = vst [vmem:[%s2279_s17] sm:$0x1] %v1527_v9 }
 0x4b9   : > { %v1982_v63 = vpop.f32.mrf.mxu1 }
 0x4ba   : > { %v1442_v24 = vadd.f32 %v1982_v63, %v1249_v62 }
 0x4bb   : > { %v1362_v11 = vpop.f32.mrf.mxu1 }
 0x4bc   : > { %1458 = vst [vmem:[%s2264_s7 + $0x8] sm:$0xff] %v1442_v24  ;;  %v1441_v19 = vadd.f32 %v1362_v11, %v1248_v22 }
 0x4be   : > { %1457 = vst [vmem:[%s2264_s7] sm:$0xff] %v1441_v19 }
 0x4c1   : > { %v1985_v35 = vpop.f32.mrf.mxu1 }
 0x4c2   : > { %v1444_v26 = vadd.f32 %v1985_v35, %v1251_v43 }
 0x4c3   : > { %v1372_v23 = vpop.f32.mrf.mxu1 }
 0x4c4   : > { %1460 = vst [vmem:[%s2264_s7 + $0x18] sm:$0xff] %v1444_v26  ;;  %v1443_v32 = vadd.f32 %v1372_v23, %v1250_v20 }
 0x4c6   : > { %1459 = vst [vmem:[%s2264_s7 + $0x10] sm:$0xff] %v1443_v32 }
 0x4c9   : > { %v1988_v44 = vpop.f32.mrf.mxu1 }
 0x4ca   : > { %v1446_v27 = vadd.f32 %v1988_v44, %v1253_v10 }
 0x4cb   : > { %v1382_v50 = vpop.f32.mrf.mxu1 }
 0x4cc   : > { %1462 = vst [vmem:[%s2264_s7 + $0x28] sm:$0xff] %v1446_v27  ;;  %v1445_v8 = vadd.f32 %v1382_v50, %v1252_v36 }
 0x4ce   : > { %1461 = vst [vmem:[%s2264_s7 + $0x20] sm:$0xff] %v1445_v8 }
 0x4d1   : > { %v1991_v16 = vpop.f32.mrf.mxu1 }
 0x4d2   : > { %v1448_v7 = vadd.f32 %v1991_v16, %v1255_v21 }
 0x4d3   : > { %v1392_v1 = vpop.f32.mrf.mxu1 }
 0x4d4   : > { %1464 = vst [vmem:[%s2264_s7 + $0x38] sm:$0xff] %v1448_v7  ;;  %v1447_v0 = vadd.f32 %v1392_v1, %v1254_v6 }
 0x4d6   : > { %1463 = vst [vmem:[%s2264_s7 + $0x30] sm:$0xff] %v1447_v0 }
 0x4d9   : > { %v1994_v3 = vpop.f32.mrf.mxu1 }
 0x4da   : > { %v1450_v14 = vadd.f32 %v1994_v3, %v1257_v53 }
 0x4db   : > { %v1402_v51 = vpop.f32.mrf.mxu1 }
 0x4dc   : > { %1466 = vst [vmem:[%s2264_s7 + $0x48] sm:$0xff] %v1450_v14  ;;  %v1449_v5 = vadd.f32 %v1402_v51, %v1256_v2 }
 0x4de   : > { %1465 = vst [vmem:[%s2264_s7 + $0x40] sm:$0xff] %v1449_v5 }
 0x4e1   : > { %v1997_v4 = vpop.f32.mrf.mxu1 }
 0x4e2   : > { %v1452_v33 = vadd.f32 %v1997_v4, %v1259_v29 }
 0x4e3   : > { %v1412_v31 = vpop.f32.mrf.mxu1 }
 0x4e4   : > { %1468 = vst [vmem:[%s2264_s7 + $0x58] sm:$0xff] %v1452_v33  ;;  %v1451_v47 = vadd.f32 %v1412_v31, %v1258_v54 }
 0x4e6   : > { %1467 = vst [vmem:[%s2264_s7 + $0x50] sm:$0xff] %v1451_v47 }
 0x4e9   : > { %v2000_v56 = vpop.f32.mrf.mxu1 }
 0x4ea   : > { %v1454_v58 = vadd.f32 %v2000_v56, %v1261_v46 }
 0x4eb   : > { %v1422_v49 = vpop.f32.mrf.mxu1 }
 0x4ec   : > { %1470 = vst [vmem:[%s2264_s7 + $0x68] sm:$0xff] %v1454_v58  ;;  %v1453_v25 = vadd.f32 %v1422_v49, %v1260_v30 }
 0x4ee   : > { %1469 = vst [vmem:[%s2264_s7 + $0x60] sm:$0xff] %v1453_v25 }
 0x4f1   : > { %v2003_v13 = vpop.f32.mrf.mxu1 }
 0x4f2   : > { %v1456_v48 = vadd.f32 %v2003_v13, %v1263_v18 }
 0x4f3   : > { %v1432_v39 = vpop.f32.mrf.mxu1 }
 0x4f4   : > { %1472 = vst [vmem:[%s2264_s7 + $0x78] sm:$0xff] %v1456_v48  ;;  %v1455_v57 = vadd.f32 %v1432_v39, %v1262_v45 }
 0x4f6   : > { %1471 = vst [vmem:[%s2264_s7 + $0x70] sm:$0xff] %v1455_v57 }
 0x4f7 PF: > { %s16_s22 = sadd.s32 1, %s2101_s22   ;;  %s2997_s18 = smov %s2093_s20 }
 0x4f8   : > { %p13_p8 = scmp.ge.s32.totalorder %s16_s22, 6   ;;  %s2998_s19 = smov %s2097_s21 }
 0x4f9   : > { %s2999_s20 = smov %s3002_s23  ;;  %s3000_s21 = smov %s3006_s24 }
 0x4fa   :  { %15 = sbr.rel (!%p13_p8) target bundleno = 3 (0x3), region = 98 }

</bundles_post_ra>
